<compile_context>
chip_gen: v5e
topology: v5e:2x2
jax: 0.10.0
libtpu: 0.0.40
codegen_flags: <defaults>
</compile_context>

<pallas_src>
import math

import jax
import jax.numpy as jnp
from jax.experimental import pallas as pl
from jax.experimental.pallas import tpu as pltpu


_LANE = 512                      # lane-dense width: multiple of 128 -> unmasked vst
_SMALL_TOTAL = 65536             # below this, fused-jnp fast path (scalar losses etc.)
_VMEM_BUDGET = 8 * 1024 * 1024   # double-buffered tile budget; fits v5e scoped VMEM
_MAX_BLOCK_ROWS = 1024


def _round_up(x, m):
    return -(-x // m) * m


# ----------------------------------------------------------------------------
# Kernels (elementwise, VPU-only; scalar params prefetched into SMEM).
# params_ref (SMEM f32[5]) = [exp(-sx), exp(-sq), sx, sq, beta]
# ----------------------------------------------------------------------------
def _fixed_kernel(params_ref, lp_ref, lr_ref, out_ref):
    beta = params_ref[4]
    lp = lp_ref[...].astype(jnp.float32)
    lr = lr_ref[...].astype(jnp.float32)
    out_ref[...] = (lp + beta * lr).astype(out_ref.dtype)


def _learned_kernel(params_ref, lp_ref, lr_ref, out_ref):
    wx, wq, sx, sq = params_ref[0], params_ref[1], params_ref[2], params_ref[3]
    lp = lp_ref[...].astype(jnp.float32)
    lr = lr_ref[...].astype(jnp.float32)
    out_ref[...] = (wx * lp + sx + wq * lr + sq).astype(out_ref.dtype)


def _both_kernel(params_ref, lp_ref, lr_ref, fixed_ref, learned_ref):
    wx, wq, sx, sq, beta = (params_ref[0], params_ref[1], params_ref[2],
                            params_ref[3], params_ref[4])
    lp = lp_ref[...].astype(jnp.float32)
    lr = lr_ref[...].astype(jnp.float32)
    fixed_ref[...] = (lp + beta * lr).astype(fixed_ref.dtype)
    learned_ref[...] = (wx * lp + sx + wq * lr + sq).astype(learned_ref.dtype)


_KERNELS = {
    "fixed": (_fixed_kernel, 1, 2),     # (kernel, n_outputs, flops/element)
    "learned": (_learned_kernel, 1, 5),
    "both": (_both_kernel, 2, 7),
}


# ----------------------------------------------------------------------------
# Wrapper helpers
# ----------------------------------------------------------------------------
def _canon(loss_pos, loss_rot):
    """Cast both losses to a common dtype (bf16 kept end-to-end, else f32)."""
    lp = jnp.asarray(loss_pos)
    lr = jnp.asarray(loss_rot)
    assert lp.shape == lr.shape, "loss_pos and loss_rot must have the same shape"
    if lp.dtype == jnp.bfloat16 and lr.dtype == jnp.bfloat16:
        out_dt = jnp.bfloat16
    else:
        out_dt = jnp.float32
    return lp.astype(out_dt), lr.astype(out_dt)


def _choose_2d_view(shape):
    """Copy-free lane-aligned 2-D view (rows, lane) with lane % 128 == 0, or None."""
    total = math.prod(shape) if len(shape) else 1
    if total == 0:
        return None
    if total % _LANE == 0:
        return total // _LANE, _LANE
    if len(shape) >= 1 and shape[-1] >= 128 and shape[-1] % 128 == 0:
        return total // shape[-1], shape[-1]
    return None


def _pick_block_rows(rows, lane, n_out, itemsize):
    """Block rows: multiple of 16, VMEM-budgeted, split for megacore when large."""
    n_ops = 2 + n_out
    br = _VMEM_BUDGET // (n_ops * 2 * lane * itemsize)   # 2 = double buffering
    br = max(16, (br // 16) * 16)
    br = min(br, _MAX_BLOCK_ROWS)
    if rows >= 4 * 128:
        # >= 4 grid steps of >= 128 rows -> both v7x TensorCores stream from HBM.
        br = min(br, max(128, _round_up(-(-rows // 4), 16)))
    br = min(br, _round_up(rows, 16))
    return max(br, 16)


def _weighting(loss_pos, loss_rot, sx, sq, beta, mode):
    """Core dispatcher. loss_pos/loss_rot already canonicalized; mode in
    {"fixed", "learned", "both"}. Returns a tuple of outputs."""
    out_dt = loss_pos.dtype
    shape = loss_pos.shape
    total = math.prod(shape) if len(shape) else 1

    sx32 = jnp.asarray(sx, jnp.float32)
    sq32 = jnp.asarray(sq, jnp.float32)
    beta32 = jnp.asarray(beta, jnp.float32)

    def _jnp_path():
        lp32 = loss_pos.astype(jnp.float32)
        lr32 = loss_rot.astype(jnp.float32)
        outs = []
        if mode in ("fixed", "both"):
            outs.append((lp32 + beta32 * lr32).astype(out_dt))
        if mode in ("learned", "both"):
            outs.append((jnp.exp(-sx32) * lp32 + sx32
                         + jnp.exp(-sq32) * lr32 + sq32).astype(out_dt))
        return tuple(outs)

    view = _choose_2d_view(shape)
    if total < _SMALL_TOTAL or view is None:
        # Tiny inputs (incl. the canonical scalar-mean-loss call) and ragged
        # shapes use fused jnp -- no Pallas launch, no padding traffic.
        # TODO(synk): a masked-tail Pallas variant could cover the (rare) large
        # ragged case; fused jnp is already near the HBM roofline for it.
        return _jnp_path()

    rows, lane = view
    kernel, n_out, flops_per = _KERNELS[mode]
    itemsize = jnp.dtype(out_dt).itemsize

    # Guard against pathological lane widths overflowing VMEM even at br=16.
    if (2 + n_out) * 2 * 16 * lane * itemsize > 12 * 1024 * 1024:
        return _jnp_path()

    br = _pick_block_rows(rows, lane, n_out, itemsize)
    grid_rows = -(-rows // br)           # edge block (if any) is masked by Pallas

    lp2 = loss_pos.reshape(rows, lane)   # contiguous reshape: free bitcast, no copy
    lr2 = loss_rot.reshape(rows, lane)
    # Scalar exps precomputed outside the kernel (no in-kernel EUP/broadcast).
    params = jnp.stack([jnp.exp(-sx32), jnp.exp(-sq32), sx32, sq32, beta32])

    blk = pl.BlockSpec((br, lane), lambda i, params: (i, 0))
    sds = jax.ShapeDtypeStruct((rows, lane), out_dt)
    if n_out == 2:
        out_shape = (sds, sds)
        out_specs = (blk, blk)
    else:
        out_shape = sds
        out_specs = blk

    cost = pl.CostEstimate(
        flops=flops_per * total,
        transcendentals=0,                          # exp hoisted to the wrapper
        bytes_accessed=(2 + n_out) * itemsize * total,
    )

    outs = pl.pallas_call(
        kernel,
        out_shape=out_shape,
        grid_spec=pltpu.PrefetchScalarGridSpec(
            num_scalar_prefetch=1,                  # params -> SMEM
            grid=(grid_rows,),
            in_specs=[blk, blk],
            out_specs=out_specs,
        ),
        compiler_params=pltpu.CompilerParams(
            dimension_semantics=("parallel",)),     # shard rows across TCs (v7x)
        cost_estimate=cost,
    )(params, lp2, lr2)

    if not isinstance(outs, (tuple, list)):
        outs = (outs,)
    return tuple(o.reshape(shape) for o in outs)


# ----------------------------------------------------------------------------
# Differentiable public API (custom VJP: pallas_call has no autodiff rule).
# ----------------------------------------------------------------------------
@jax.custom_vjp
def _fixed_core(lp, lr, beta):
    return _weighting(lp, lr, 0.0, 0.0, beta, "fixed")[0]


def _fixed_fwd(lp, lr, beta):
    return _weighting(lp, lr, 0.0, 0.0, beta, "fixed")[0], (lr, beta)


def _fixed_bwd(res, g):
    lr, beta = res
    g32 = g.astype(jnp.float32)
    d_lp = g
    d_lr = (beta * g32).astype(lr.dtype)
    d_beta = jnp.sum(g32 * lr.astype(jnp.float32)).reshape(jnp.shape(beta)).astype(beta.dtype)
    return d_lp, d_lr, d_beta


_fixed_core.defvjp(_fixed_fwd, _fixed_bwd)


@jax.custom_vjp
def _learned_core(lp, lr, sx, sq):
    return _weighting(lp, lr, sx, sq, 1.0, "learned")[0]


def _learned_fwd(lp, lr, sx, sq):
    return _weighting(lp, lr, sx, sq, 1.0, "learned")[0], (lp, lr, sx, sq)


def _learned_bwd(res, g):
    lp, lr, sx, sq = res
    g32 = g.astype(jnp.float32)
    wx = jnp.exp(-sx)
    wq = jnp.exp(-sq)
    d_lp = (wx * g32).astype(lp.dtype)
    d_lr = (wq * g32).astype(lr.dtype)
    d_sx = jnp.sum(g32 * (1.0 - wx * lp.astype(jnp.float32))).reshape(jnp.shape(sx)).astype(sx.dtype)
    d_sq = jnp.sum(g32 * (1.0 - wq * lr.astype(jnp.float32))).reshape(jnp.shape(sq)).astype(sq.dtype)
    return d_lp, d_lr, d_sx, d_sq


_learned_core.defvjp(_learned_fwd, _learned_bwd)


def fixed_weighting_loss(loss_pos, loss_rot, beta=1.0):
    """BaseNet.fixed_weighting_loss: loss_pos + beta * loss_rot."""
    lp, lr = _canon(loss_pos, loss_rot)
    return _fixed_core(lp, lr, jnp.asarray(beta, jnp.float32))


def learned_weighting_loss(loss_pos, loss_rot, sx, sq):
    """BaseNet.learned_weighting_loss: exp(-sx)*lp + sx + exp(-sq)*lr + sq."""
    lp, lr = _canon(loss_pos, loss_rot)
    return _learned_core(lp, lr, jnp.asarray(sx, jnp.float32), jnp.asarray(sq, jnp.float32))


def basenet_loss_weighting(loss_pos, loss_rot, sx, sq, beta=1.0, compute="both"):
    """compute='fixed'|'learned'|'both'. 'both' uses the fused 2-output kernel
    (single read of the loss tensors)."""
    if compute == "fixed":
        return fixed_weighting_loss(loss_pos, loss_rot, beta)
    if compute == "learned":
        return learned_weighting_loss(loss_pos, loss_rot, sx, sq)
    lp, lr = _canon(loss_pos, loss_rot)
    # TODO(synk): the fused "both" path has no custom VJP; use compute="fixed"/
    # "learned" (or the individual functions above) when gradients are required.
    return _weighting(lp, lr, jnp.asarray(sx, jnp.float32),
                      jnp.asarray(sq, jnp.float32),
                      jnp.asarray(beta, jnp.float32), "both")


if __name__ == "__main__":
    key = jax.random.PRNGKey(0)
    k1, k2 = jax.random.split(key)

    sx, sq, beta = 0.0, -3.0, 1.0
    sx32 = jnp.float32(sx)
    sq32 = jnp.float32(sq)

    # 1) Per-element loss maps large enough to exercise the fused Pallas path
    #    (both outputs, single read of lp/lr, 4-step "parallel" grid).
    B, N = 512, 512
    loss_pos = jnp.abs(jax.random.normal(k1, (B, N), dtype=jnp.float32))
    loss_rot = jnp.abs(jax.random.normal(k2, (B, N), dtype=jnp.float32))

    fixed, learned = basenet_loss_weighting(loss_pos, loss_rot, sx, sq, beta)
    jax.block_until_ready((fixed, learned))

    fixed_ref = loss_pos + beta * loss_rot
    learned_ref = (jnp.exp(-sx32) * loss_pos + sx32
                   + jnp.exp(-sq32) * loss_rot + sq32)
    assert fixed.shape == (B, N) and learned.shape == (B, N)
    assert jnp.allclose(fixed, fixed_ref, atol=1e-4, rtol=1e-5)
    assert jnp.allclose(learned, learned_ref, atol=1e-4, rtol=1e-5)

    # 2) Single-output entry points (one output -> ~25% less HBM traffic).
    fixed_only = fixed_weighting_loss(loss_pos, loss_rot, beta)
    learned_only = learned_weighting_loss(loss_pos, loss_rot, sx, sq)
    jax.block_until_ready((fixed_only, learned_only))
    assert jnp.allclose(fixed_only, fixed_ref, atol=1e-4, rtol=1e-5)
    assert jnp.allclose(learned_only, learned_ref, atol=1e-4, rtol=1e-5)

    # 3) bf16 end-to-end on the Pallas path (half the bytes/element).
    lp_bf = loss_pos.astype(jnp.bfloat16)
    lr_bf = loss_rot.astype(jnp.bfloat16)
    learned_bf = learned_weighting_loss(lp_bf, lr_bf, sx, sq)
    jax.block_until_ready(learned_bf)
    assert learned_bf.dtype == jnp.bfloat16
    learned_bf_ref = (jnp.exp(-sx32) * lp_bf.astype(jnp.float32) + sx32
                      + jnp.exp(-sq32) * lr_bf.astype(jnp.float32) + sq32)
    assert jnp.allclose(learned_bf.astype(jnp.float32), learned_bf_ref,
                        rtol=2e-2, atol=2e-2)

    # 4) Scalar (mean) losses -- canonical PyTorch call pattern; tiny-input
    #    jnp fast path (no Pallas launch, no padding traffic).
    lp_s = jnp.mean(loss_pos)
    lr_s = jnp.mean(loss_rot)
    fixed_s, learned_s = basenet_loss_weighting(lp_s, lr_s, sx, sq, beta)
    jax.block_until_ready((fixed_s, learned_s))
    assert fixed_s.shape == () and learned_s.shape == ()
    assert jnp.allclose(fixed_s, lp_s + beta * lr_s, atol=1e-4, rtol=1e-5)
    assert jnp.allclose(
        learned_s,
        jnp.exp(-sx32) * lp_s + sx32 + jnp.exp(-sq32) * lr_s + sq32,
        atol=1e-4, rtol=1e-5)

    # 5) Gradients flow to sx/sq through the custom VJP (training path).
    def scalar_loss(sx_v, sq_v):
        return learned_weighting_loss(lp_s, lr_s, sx_v, sq_v)

    g_sx, g_sq = jax.grad(scalar_loss, argnums=(0, 1))(sx32, sq32)
    jax.block_until_ready((g_sx, g_sq))
    exp_g_sx = 1.0 - jnp.exp(-sx32) * lp_s
    exp_g_sq = 1.0 - jnp.exp(-sq32) * lr_s
    assert jnp.allclose(g_sx, exp_g_sx, atol=1e-4, rtol=1e-5)
    assert jnp.allclose(g_sq, exp_g_sq, atol=1e-4, rtol=1e-5)

    print("KERNEL_OK")
</pallas_src>

<mosaic_0001>
module attributes {stable_mosaic.version = 11 : i64} {
  func.func @_both_kernel(%arg0: i32, %arg1: memref<5xf32, #tpu.memory_space<smem>>, %arg2: memref<128x512xf32, #tpu.memory_space<vmem>>, %arg3: memref<128x512xf32, #tpu.memory_space<vmem>>, %arg4: memref<128x512xf32, #tpu.memory_space<vmem>>, %arg5: memref<128x512xf32, #tpu.memory_space<vmem>>) attributes {dimension_semantics = [#tpu.dimension_semantics<parallel>], iteration_bounds = array<i64: 4>, scalar_prefetch = 1 : i64, scratch_operands = 0 : i64, tpu.core_type = #tpu.core_type<tc>, window_params = [{transform_indices = @transform_0, window_bounds = array<i64: 128, 512>}, {transform_indices = @transform_1, window_bounds = array<i64: 128, 512>}, {transform_indices = @transform_2, window_bounds = array<i64: 128, 512>}, {transform_indices = @transform_3, window_bounds = array<i64: 128, 512>}]} {
    %c0 = arith.constant 0 : index
    %0 = memref.load %arg1[%c0] : memref<5xf32, #tpu.memory_space<smem>>
    %c1 = arith.constant 1 : index
    %1 = memref.load %arg1[%c1] : memref<5xf32, #tpu.memory_space<smem>>
    %c2 = arith.constant 2 : index
    %2 = memref.load %arg1[%c2] : memref<5xf32, #tpu.memory_space<smem>>
    %c3 = arith.constant 3 : index
    %3 = memref.load %arg1[%c3] : memref<5xf32, #tpu.memory_space<smem>>
    %c4 = arith.constant 4 : index
    %4 = memref.load %arg1[%c4] : memref<5xf32, #tpu.memory_space<smem>>
    %c0_0 = arith.constant 0 : index
    %c0_1 = arith.constant 0 : index
    %5 = vector.load %arg2[%c0_0, %c0_1] : memref<128x512xf32, #tpu.memory_space<vmem>>, vector<128x512xf32>
    %c0_2 = arith.constant 0 : index
    %c0_3 = arith.constant 0 : index
    %6 = vector.load %arg3[%c0_2, %c0_3] : memref<128x512xf32, #tpu.memory_space<vmem>>, vector<128x512xf32>
    %7 = vector.broadcast %4 : f32 to vector<128x512xf32>
    %8 = arith.mulf %7, %6 : vector<128x512xf32>
    %9 = arith.addf %5, %8 : vector<128x512xf32>
    %c0_4 = arith.constant 0 : index
    %c0_5 = arith.constant 0 : index
    %10 = vector.load %arg4[%c0_4, %c0_5] : memref<128x512xf32, #tpu.memory_space<vmem>>, vector<128x512xf32>
    tpu.vector_store %arg4[%c0_4, %c0_5], %9 {strides = array<i32>} : memref<128x512xf32, #tpu.memory_space<vmem>>, vector<128x512xf32>,
    %11 = vector.broadcast %0 : f32 to vector<128x512xf32>
    %12 = arith.mulf %11, %5 : vector<128x512xf32>
    %13 = vector.broadcast %2 : f32 to vector<128x512xf32>
    %14 = arith.addf %12, %13 : vector<128x512xf32>
    %15 = vector.broadcast %1 : f32 to vector<128x512xf32>
    %16 = arith.mulf %15, %6 : vector<128x512xf32>
    %17 = arith.addf %14, %16 : vector<128x512xf32>
    %18 = vector.broadcast %3 : f32 to vector<128x512xf32>
    %19 = arith.addf %17, %18 : vector<128x512xf32>
    %c0_6 = arith.constant 0 : index
    %c0_7 = arith.constant 0 : index
    %20 = vector.load %arg5[%c0_6, %c0_7] : memref<128x512xf32, #tpu.memory_space<vmem>>, vector<128x512xf32>
    tpu.vector_store %arg5[%c0_6, %c0_7], %19 {strides = array<i32>} : memref<128x512xf32, #tpu.memory_space<vmem>>, vector<128x512xf32>,
    return
  }
  func.func @transform_0(%arg0: i32, %arg1: memref<5xf32, #tpu.memory_space<smem>>) -> (i32, i32) {
    %c0_i32 = arith.constant 0 : i32
    %c0_i32_0 = arith.constant 0 : i32
    return %arg0, %c0_i32 : i32, i32
  }
  func.func @transform_1(%arg0: i32, %arg1: memref<5xf32, #tpu.memory_space<smem>>) -> (i32, i32) {
    %c0_i32 = arith.constant 0 : i32
    %c0_i32_0 = arith.constant 0 : i32
    return %arg0, %c0_i32 : i32, i32
  }
  func.func @transform_2(%arg0: i32, %arg1: memref<5xf32, #tpu.memory_space<smem>>) -> (i32, i32) {
    %c0_i32 = arith.constant 0 : i32
    %c0_i32_0 = arith.constant 0 : i32
    return %arg0, %c0_i32 : i32, i32
  }
  func.func @transform_3(%arg0: i32, %arg1: memref<5xf32, #tpu.memory_space<smem>>) -> (i32, i32) {
    %c0_i32 = arith.constant 0 : i32
    %c0_i32_0 = arith.constant 0 : i32
    return %arg0, %c0_i32 : i32, i32
  }
}

</mosaic_0001>

<bundles_post_ra>
// kernel: tpu_custom_call.1
= control target key start
LH: loop header
LB: loop body
LE: loop exit
PB: predicated region body
PF: predicated region fallthrough
CT: control target
= control target key end

     0   :  { %s1419_s18 = smov [#allocation3]   ;;  %s2816_s0 = inlined_call_operand.hbm [shape: f32[5], index: 0, kind: input, shape index: {}]   ;;  %s2817_s1 = inlined_call_operand.hbm [shape: f32[512,512], index: 1, kind: input, shape index: {}]   ;;  %s2818_s2 = inlined_call_operand.hbm [shape: f32[512,512], index: 2, kind: input, shape index: {}]   ;;  %s2819_s3 = inlined_call_operand.hbm [shape: f32[512,512], index: 3, kind: output, shape index: {0}]   ;;  %s2820_s4 = inlined_call_operand.hbm [shape: f32[512,512], index: 4, kind: output, shape index: {1}]  }
   0x1   :  { %2869 = sst [smem:[#allocation102_spill]] %s2817_s1  ;;  %s11_s17 = sshll.u32 %s2816_s0, 4  ;;  %s12_s17 = int_to_ptr.hbm [resolvable:$true] %s11_s17 }
   0x2   :  { %14 = dma.hbm_to_smem %s12_s17, 16, %s1419_s18, [#allocation2] }
   0x3   :  { %1385 = dma.done.wait [#allocation2], 16 }
   0x4   :  { %1386 = vsyncadd [#allocation2], 4294967280 }
   0x5   :  { %17 = sfence }
   0x6   :  { %18 = vsyncpa [#allocation5], 0 }
   0x7   :  { %20 = vsyncpa [#allocation5 + $0x1], 0 }
   0x8   :  { %21 = vsyncpa [#allocation8], 0 }
   0x9   :  { %23 = vsyncpa [#allocation8 + $0x1], 0 }
   0xa   :  { %24 = vsyncpa [#allocation6], 0 }
   0xb   :  { %26 = vsyncpa [#allocation6 + $0x1], 0 }
   0xc   :  { %27 = vsyncpa [#allocation11], 0 }
   0xd   :  { %29 = vsyncpa [#allocation11 + $0x1], 0  ;;  %s1452_s19 = smov 0   ;;  %s1454_s20 = smov 0  }
   0xe   :  { %s1456_s21 = smov 0   ;;  %s1458_s0 = smov 0  }
   0xf LB: > { %s1473_s22 = sadd.s32 4294967295, %s1417_s0   ;;  %s1142_s23 = sadd.s32 4294967294, %s1417_s0   ;;  %s1417_s0 = sphi %s1458_s0, %s3050_s0   ;;  %s1413_s21 = sphi %s1456_s21, %s3049_s21   ;;  %s1409_s20 = sphi %s1454_s20, %s3048_s20   ;;  %s1405_s19 = sphi %s1452_s19, %s3047_s19  }
  0x10   : > { %s1477_s24 = sadd.s32 1, %s1417_s0   ;;  %s42_s25 = sadd.s32 1, %s1413_s21 }
  0x11   : > { %s39_s26 = ssub.s32 %s1417_s0, %s1477_s24  ;;  %p49_p0 = scmp.ne.s32.totalorder %s1413_s21, %s1409_s20 }
  0x12   : > { %p40_p1 = scmp.eq.s32.totalorder %s39_s26, 0  ;;  %p50_p2 = scmp.eq.s32.totalorder %s1417_s0, 0 }
  0x13   : > { %p55_p3 = scmp.ne.s32.totalorder %s1409_s20, %s1405_s19  ;;  %p56_p4 = scmp.eq.s32.totalorder %s1473_s22, 0 }
  0x14   : > { %s1489_s27 = scalar_select %p40_p1, %s1413_s21, %s42_s25  }
  0x15   : > { %p1491_p5 = por %p50_p2, %p49_p0  ;;  %p1495_p6 = por %p56_p4, %p55_p3 }
  0x16   : > { %p105_p7 = scmp.eq.s32.totalorder %s1473_s22, 3  ;;  %p111_p8 = scmp.eq.s32.totalorder %s1142_s23, 3 }
  0x17   : > { %p1202_p9 = scmp.lt.s32.totalorder %s1417_s0, 4  ;;  %s1510_s6 = sand.u32 1, %s1413_s21  }
  0x18   : > { %p1501_p10 = por %p105_p7, %p49_p0  ;;  %p1505_p11 = por %p111_p8, %p55_p3 }
  0x19   : > { %s1173_s7 = sshll.u32 %s1417_s0, 9  ;;  %s1145_s8 = sshll.u32 %s1510_s6, 9 }
  0x1a   : > { %s2874_s1 = sld [smem:[#allocation102_spill]]  ;;  %s161_s13 = scalar_lea.vmem [#allocation4], %s1145_s8 }
  0x1b   : > { %s170_s14 = sshll.u32 %s161_s13, 4  ;;  %p1523_p12 = pnand %p1202_p9, %p1491_p5  ;;  %s171_s14 = int_to_ptr.vmem [resolvable:$true] %s170_s14 }
  0x1c   : > { %p1153_p13 = scmp.ge.s32.totalorder %s1417_s0, 1  ;;  %p201_p0 = scmp.lt.s32.totalorder %s1417_s0, 5 }
  0x1d   : > { %s158_s16 = scalar_lea.sflag [#allocation5], %s1510_s6  ;;  %p1257_p2 = pneg %p1523_p12 }
  0x20   : > { %s167_s11 = scalar_lea.hbm %s2874_s1, %s1173_s7  ;;  %s1260_s26 = scalar_lea.hbm %s2874_s1, 2048 }
  0x21   : > { %s168_s12 = sshll.u32 %s167_s11, 4  ;;  %s169_s12 = int_to_ptr.hbm [resolvable:$true] %s168_s12 }
  0x22   : > { %s1253_s17 = sshra.s32 %s169_s12, 4  ;;  %s1254_s17 = int_to_ptr.hbm [resolvable:$true] %s1253_s17 }
  0x23   : > { %s1255_s18 = scalar_lea.hbm %s1254_s17, 512  ;;  %p1261_p5 = scmp.lt.s32.totalorder %s1254_s17, %s2874_s1 }
  0x24   : > { %p1256_p1 = scmp.ne.s32.totalorder %s1254_s17, %s1255_s18  ;;  %p1262_p7 = scmp.lt.s32.totalorder %s1260_s26, %s1255_s18 }
  0x26   : > { %p1258_p3 = pnand %p1257_p2, %p1256_p1  ;;  %p1263_p8 = por %p1262_p7, %p1261_p5 }
  0x28   : > { %p1259_p4 = pneg %p1258_p3 }
  0x2a   : > { %p1264_p9 = pnand %p1263_p8, %p1259_p4 }
  0x2c   : > { %1267 = shalt.err (!%p1264_p9)
}
  0x2d   : > { %s1420_s10 = smov 512   ;;  %s1421_s11 = smov 32  }
  0x2e   : > { %1191 = dma.hbm_to_vmem [thread:$0]  (!%p1523_p12), %s169_s12, 8192, %s171_s14, %s158_s16, %s1420_s10, %s1420_s10, %s1421_s11  }
  0x2f   : > { %p1547_p1 = pnand %p1153_p13, %p201_p0  ;;  %s190_s23 = scalar_lea.hbm %s2818_s2, %s1173_s7 }
  0x30   : > { %s191_s25 = sshll.u32 %s190_s23, 4  ;;  %s184_s26 = scalar_lea.vmem [#allocation7], %s1145_s8  ;;  %s192_s25 = int_to_ptr.hbm [resolvable:$true] %s191_s25 }
  0x31   : > { %s193_s28 = sshll.u32 %s184_s26, 4  ;;  %s181_s9 = scalar_lea.sflag [#allocation8], %s1510_s6  ;;  %s194_s28 = int_to_ptr.vmem [resolvable:$true] %s193_s28 }
  0x32   : > { %s1283_s1 = sshra.s32 %s192_s25, 4  ;;  %s1290_s17 = scalar_lea.hbm %s2818_s2, 2048  ;;  %s1284_s1 = int_to_ptr.hbm [resolvable:$true] %s1283_s1 }
  0x33   : > { %s1285_s12 = scalar_lea.hbm %s1284_s1, 512  ;;  %p1291_p4 = scmp.lt.s32.totalorder %s1284_s1, %s2818_s2 }
  0x34   : > { %p1286_p3 = scmp.ne.s32.totalorder %s1284_s1, %s1285_s12  ;;  %p1292_p5 = scmp.lt.s32.totalorder %s1290_s17, %s1285_s12 }
  0x36   : > { %p1288_p13 = pnand %p1286_p3, %p1257_p2  ;;  %p1293_p7 = por %p1292_p5, %p1291_p4 }
  0x38   : > { %p1289_p0 = pneg %p1288_p13 }
  0x3a   : > { %p1294_p8 = pnand %p1293_p7, %p1289_p0 }
  0x3c   : > { %1297 = shalt.err (!%p1294_p8)
}
  0x3d   : > { %1194 = dma.hbm_to_vmem [thread:$0]  (!%p1523_p12), %s192_s25, 8192, %s194_s28, %s181_s9, %s1420_s10, %s1420_s10, %s1421_s11  }
  0x3e   : > { %205 = sbr.rel (%p1547_p1) target bundleno = 311 (0x137), region = 28 }
  0x43   : > { %s1573_s6 = sand.u32 1, %s1409_s20  }
  0x44   : > { %s1576_s8 = sshll.u32 %s1573_s6, 9  ;;  %s208_s1 = scalar_lea.sflag [#allocation5], %s1573_s6 }
  0x45   : > { %s1580_s23 = scalar_lea.vmem [#allocation4], %s1576_s8 }
  0x46   : > { %1388 = dma.done.wait (%p1495_p6), %s208_s1, 8192  }
  0x47   : > { %1390 = vsyncadd (%p1495_p6), %s208_s1, 4294959104  ;;  %s218_s15 = scalar_lea.sflag [#allocation8], %s1573_s6  ;;  %s1588_s10 = scalar_lea.vmem [#allocation7], %s1576_s8 }
  0x48   : > { %1392 = dma.done.wait (%p1495_p6), %s218_s15, 8192  }
  0x49   : > { %1394 = vsyncadd (%p1495_p6), %s218_s15, 4294959104  ;;  %s1161_s11 = sld [smem:[#allocation3 + $0x4]]  ;;  %v1595_v0 = vld [vmem:[%s1588_s10] sm:$0xff]  ;;  %v1600_v2 = vld [vmem:[%s1588_s10 + $0x8] sm:$0xff]  ;;  %s1654_s29 = scalar_lea.vmem [#allocation9], %s1576_s8 }
  0x4a   : > { %v1603_v3 = vld [vmem:[%s1588_s10 + $0x10] sm:$0xff]  ;;  %v1606_v4 = vld [vmem:[%s1580_s23] sm:$0xff]  ;;  %v1615_v8 = vld [vmem:[%s1588_s10 + $0x18] sm:$0xff]  ;;  %s1731_s13 = sld [smem:[#allocation3]]  ;;  %s2424_s9 = scalar_lea.vmem [#allocation10], %s1576_s8 }
  0x4b   : > { %v1618_v9 = vld [vmem:[%s1580_s23 + $0x8] sm:$0xff]  ;;  %v1621_v10 = vld [vmem:[%s1580_s23 + $0x10] sm:$0xff]  ;;  %v1626_v12 = vld [vmem:[%s1588_s10 + $0x20] sm:$0xff]  ;;  %s2193_s25 = sld [smem:[#allocation3 + $0x1]]  ;;  %s1177_s12 = sshll.u32 %s1473_s22, 9 }
  0x4c   : > { %v1632_v16 = vld [vmem:[%s1580_s23 + $0x18] sm:$0xff]  ;;  %v1637_v18 = vld [vmem:[%s1588_s10 + $0x28] sm:$0xff]  ;;  %v1640_v19 = vld [vmem:[%s1588_s10 + $0x30] sm:$0xff]  ;;  %s2207_s26 = sld [smem:[#allocation3 + $0x2]]  ;;  %s991_s17 = scalar_lea.hbm %s2819_s3, %s1177_s12 }
  0x4d   : > { %v1644_v21 = vld [vmem:[%s1580_s23 + $0x20] sm:$0xff]  ;;  %v1651_v24 = vld [vmem:[%s1588_s10 + $0x38] sm:$0xff]  ;;  %v1659_v26 = vld [vmem:[%s1580_s23 + $0x28] sm:$0xff]  ;;  %s2305_s28 = sld [smem:[#allocation3 + $0x3]]  ;;  %s992_s22 = sshll.u32 %s1654_s29, 4  ;;  %s2760_s22 = int_to_ptr.vmem [resolvable:$true] %s992_s22 }
  0x4e   : > { %v1664_v28 = vld [vmem:[%s1588_s10 + $0x40] sm:$0xff]  ;;  %v1669_v30 = vld [vmem:[%s1580_s23 + $0x30] sm:$0xff]  ;;  %v1674_v32 = vld [vmem:[%s1588_s10 + $0x48] sm:$0xff]  ;;  %s1009_s8 = scalar_lea.hbm %s2820_s4, %s1177_s12  ;;  %s994_s1 = sshll.u32 %s991_s17, 4  ;;  %s995_s1 = int_to_ptr.hbm [resolvable:$true] %s994_s1 }
  0x4f   : > { %v1597_v1 = vstv %s1161_s11  ;;  %v1677_v33 = vld [vmem:[%s1588_s10 + $0x50] sm:$0xff]  ;;  %v1682_v35 = vld [vmem:[%s1580_s23 + $0x38] sm:$0xff]  ;;  %v1694_v40 = vld [vmem:[%s1580_s23 + $0x40] sm:$0xff]  ;;  %s1012_s15 = sshll.u32 %s1009_s8, 4  ;;  %s1327_s11 = sshra.s32 %s995_s1, 4  ;;  %s2770_s15 = int_to_ptr.hbm [resolvable:$true] %s1012_s15  ;;  %s1328_s11 = int_to_ptr.hbm [resolvable:$true] %s1327_s11 }
  0x50   : > { %v393_v5 = vmul.f32 %v1597_v1, %v1595_v0  ;;  %v394_v6 = vmul.f32 %v1597_v1, %v1600_v2  ;;  %v395_v7 = vmul.f32 %v1597_v1, %v1603_v3  ;;  %v396_v11 = vmul.f32 %v1597_v1, %v1615_v8  ;;  %v1689_v38 = vld [vmem:[%s1588_s10 + $0x58] sm:$0xff]  ;;  %v1699_v42 = vld [vmem:[%s1588_s10 + $0x60] sm:$0xff]  ;;  %v1704_v44 = vld [vmem:[%s1580_s23 + $0x48] sm:$0xff]  ;;  %p1334_p9 = scmp.lt.s32.totalorder %s1328_s11, %s2819_s3 }
  0x51   : > { %v397_v17 = vmul.f32 %v1597_v1, %v1626_v12  ;;  %v398_v22 = vmul.f32 %v1597_v1, %v1637_v18  ;;  %v399_v23 = vmul.f32 %v1597_v1, %v1640_v19  ;;  %v400_v27 = vmul.f32 %v1597_v1, %v1651_v24  ;;  %v1709_v46 = vld [vmem:[%s1588_s10 + $0x68] sm:$0xff]  ;;  %v1714_v48 = vld [vmem:[%s1580_s23 + $0x50] sm:$0xff]  ;;  %v1724_v52 = vld [vmem:[%s1580_s23 + $0x58] sm:$0xff] }
  0x52   : > { %v457_v13 = vadd.f32 %v393_v5, %v1606_v4  ;;  %v458_v14 = vadd.f32 %v394_v6, %v1618_v9  ;;  %v459_v15 = vadd.f32 %v395_v7, %v1621_v10  ;;  %v460_v20 = vadd.f32 %v396_v11, %v1632_v16  ;;  %v1719_v50 = vld [vmem:[%s1588_s10 + $0x70] sm:$0xff]  ;;  %v1729_v54 = vld [vmem:[%s1588_s10 + $0x78] sm:$0xff]  ;;  %v1736_v56 = vld [vmem:[%s1580_s23 + $0x60] sm:$0xff] }
  0x53   : > { %v461_v25 = vadd.f32 %v397_v17, %v1644_v21  ;;  %v462_v29 = vadd.f32 %v398_v22, %v1659_v26  ;;  %v401_v31 = vmul.f32 %v1597_v1, %v1664_v28  ;;  %v463_v34 = vadd.f32 %v399_v23, %v1669_v30  ;;  %2877 = vst [vmem:[#allocation17_spill] sm:$0xff] %v1729_v54  ;;  %v1741_v58 = vld [vmem:[%s1588_s10 + $0x80] sm:$0xff]  ;;  %v1746_v60 = vld [vmem:[%s1580_s23 + $0x68] sm:$0xff]  ;;  %v1756_v5 = vld [vmem:[%s1580_s23 + $0x70] sm:$0xff] }
  0x54   : > { %521 = vst [vmem:[%s1654_s29] sm:$0xff] %v457_v13  ;;  %v402_v36 = vmul.f32 %v1597_v1, %v1674_v32  ;;  %v403_v37 = vmul.f32 %v1597_v1, %v1677_v33  ;;  %v464_v39 = vadd.f32 %v400_v27, %v1682_v35  ;;  %v404_v41 = vmul.f32 %v1597_v1, %v1689_v38  ;;  %v1751_v62 = vld [vmem:[%s1588_s10 + $0x88] sm:$0xff]  ;;  %v1761_v7 = vld [vmem:[%s1588_s10 + $0x90] sm:$0xff]  ;;  %v1766_v13 = vld [vmem:[%s1580_s23 + $0x78] sm:$0xff] }
  0x55   : > { %522 = vst [vmem:[%s1654_s29 + $0x8] sm:$0xff] %v458_v14  ;;  %v465_v43 = vadd.f32 %v401_v31, %v1694_v40  ;;  %v405_v45 = vmul.f32 %v1597_v1, %v1699_v42  ;;  %v406_v49 = vmul.f32 %v1597_v1, %v1709_v46  ;;  %v407_v53 = vmul.f32 %v1597_v1, %v1719_v50  ;;  %v1781_v23 = vld [vmem:[%s1588_s10 + $0xa0] sm:$0xff]  ;;  %v1786_v27 = vld [vmem:[%s1580_s23 + $0x88] sm:$0xff] }
  0x56   : > { %523 = vst [vmem:[%s1654_s29 + $0x10] sm:$0xff] %v459_v15  ;;  %v466_v47 = vadd.f32 %v402_v36, %v1704_v44  ;;  %v467_v51 = vadd.f32 %v403_v37, %v1714_v48  ;;  %v468_v55 = vadd.f32 %v404_v41, %v1724_v52  ;;  %v408_v57 = vmul.f32 %v1597_v1, %v1729_v54  ;;  %v1771_v15 = vld [vmem:[%s1588_s10 + $0x98] sm:$0xff]  ;;  %v1791_v31 = vld [vmem:[%s1588_s10 + $0xa8] sm:$0xff]  ;;  %v1796_v36 = vld [vmem:[%s1580_s23 + $0x90] sm:$0xff] }
  0x57   : > { %524 = vst [vmem:[%s1654_s29 + $0x18] sm:$0xff] %v460_v20  ;;  %v469_v59 = vadd.f32 %v405_v45, %v1736_v56  ;;  %v409_v61 = vmul.f32 %v1597_v1, %v1741_v58  ;;  %v470_v63 = vadd.f32 %v406_v49, %v1746_v60  ;;  %v410_v6 = vmul.f32 %v1597_v1, %v1751_v62  ;;  %v1776_v20 = vld [vmem:[%s1580_s23 + $0x80] sm:$0xff] }
  0x58   : > { %525 = vst [vmem:[%s1654_s29 + $0x20] sm:$0xff] %v461_v25  ;;  %v471_v11 = vadd.f32 %v407_v53, %v1756_v5  ;;  %v411_v14 = vmul.f32 %v1597_v1, %v1761_v7  ;;  %v472_v17 = vadd.f32 %v408_v57, %v1766_v13  ;;  %v412_v22 = vmul.f32 %v1597_v1, %v1771_v15  ;;  %v1819_v53 = vld [vmem:[%s1580_s23 + $0xa0] sm:$0xff] }
  0x59   : > { %526 = vst [vmem:[%s1654_s29 + $0x28] sm:$0xff] %v462_v29  ;;  %v473_v25 = vadd.f32 %v409_v61, %v1776_v20  ;;  %v413_v29 = vmul.f32 %v1597_v1, %v1781_v23  ;;  %v414_v37 = vmul.f32 %v1597_v1, %v1791_v31  ;;  %v1814_v49 = vstv %s1731_s13  ;;  %v1824_v57 = vld [vmem:[%s1588_s10 + $0xc0] sm:$0xff]  ;;  %v1829_v61 = vld [vmem:[%s1580_s23 + $0xa8] sm:$0xff] }
  0x5a   : > { %527 = vst [vmem:[%s1654_s29 + $0x30] sm:$0xff] %v463_v34  ;;  %v474_v34 = vadd.f32 %v410_v6, %v1786_v27  ;;  %v475_v41 = vadd.f32 %v411_v14, %v1796_v36  ;;  %v1834_v6 = vld [vmem:[%s1588_s10 + $0xc8] sm:$0xff]  ;;  %v1839_v14 = vld [vmem:[%s1580_s23 + $0xb0] sm:$0xff]  ;;  %v1995_v54 = vmul.f32 %v1814_v49, %v1786_v27  ;;  %v2014_v27 = vmul.f32 %v1814_v49, %v1819_v53 }
  0x5b   : > { %528 = vst [vmem:[%s1654_s29 + $0x38] sm:$0xff] %v464_v39  ;;  %v1801_v39 = vld [vmem:[%s1588_s10 + $0xb0] sm:$0xff] }
  0x5c   : > { %2878 = vst [vmem:[#allocation18_spill] sm:$0xff] %v1741_v58  ;;  %v415_v45 = vmul.f32 %v1597_v1, %v1801_v39  ;;  %v1980_v58 = vmul.f32 %v1814_v49, %v1766_v13  ;;  %v1999_v13 = vmul.f32 %v1814_v49, %v1796_v36 }
  0x5d   : > { %529 = vst [vmem:[%s1654_s29 + $0x40] sm:$0xff] %v465_v43  ;;  %v1806_v43 = vld [vmem:[%s1580_s23 + $0x98] sm:$0xff] }
  0x5e   : > { %2879 = vst [vmem:[#allocation19_spill] sm:$0xff] %v1751_v62  ;;  %v1965_v62 = vmul.f32 %v1814_v49, %v1746_v60  ;;  %v1984_v60 = vmul.f32 %v1814_v49, %v1776_v20 }
  0x5f   : > { %530 = vst [vmem:[%s1654_s29 + $0x48] sm:$0xff] %v466_v47  ;;  %v1811_v47 = vld [vmem:[%s1588_s10 + $0xb8] sm:$0xff] }
  0x60   : > { %2880 = vst [vmem:[#allocation20_spill] sm:$0xff] %v1761_v7 }
  0x61   : > { %531 = vst [vmem:[%s1654_s29 + $0x50] sm:$0xff] %v467_v51  ;;  %v476_v51 = vadd.f32 %v412_v22, %v1806_v43  ;;  %v1844_v22 = vld [vmem:[%s1588_s10 + $0xd0] sm:$0xff] }
  0x62   : > { %2881 = vst [vmem:[#allocation21_spill] sm:$0xff] %v1771_v15  ;;  %v1946_v15 = vld [vmem:[%s1588_s10 + $0x100] sm:$0xff] }
  0x63   : > { %532 = vst [vmem:[%s1654_s29 + $0x58] sm:$0xff] %v468_v55  ;;  %v416_v55 = vmul.f32 %v1597_v1, %v1811_v47  ;;  %v425_v7 = vmul.f32 %v1597_v1, %v1946_v15 }
  0x64   : > { %2882 = vst [vmem:[#allocation22_spill] sm:$0xff] %v1781_v23  ;;  %v1930_v23 = vld [vmem:[%s1588_s10 + $0xf8] sm:$0xff] }
  0x65   : > { %533 = vst [vmem:[%s1654_s29 + $0x60] sm:$0xff] %v469_v59  ;;  %v477_v59 = vadd.f32 %v413_v29, %v1819_v53  ;;  %v479_v29 = vadd.f32 %v415_v45, %v1839_v14  ;;  %v1871_v45 = vld [vmem:[%s1580_s23 + $0xc0] sm:$0xff] }
  0x66   : > { %2883 = vst [vmem:[#allocation23_spill] sm:$0xff] %v1791_v31  ;;  %v1912_v31 = vld [vmem:[%s1588_s10 + $0xf0] sm:$0xff] }
  0x67   : > { %534 = vst [vmem:[%s1654_s29 + $0x68] sm:$0xff] %v470_v63  ;;  %v417_v63 = vmul.f32 %v1597_v1, %v1824_v57 }
  0x68   : > { %2884 = vst [vmem:[#allocation24_spill] sm:$0xff] %v1801_v39  ;;  %v1894_v39 = vld [vmem:[%s1588_s10 + $0xe8] sm:$0xff] }
  0x69   : > { %535 = vst [vmem:[%s1654_s29 + $0x70] sm:$0xff] %v471_v11  ;;  %v478_v11 = vadd.f32 %v414_v37, %v1829_v61  ;;  %v419_v37 = vmul.f32 %v1597_v1, %v1844_v22 }
  0x6a   : > { %2885 = vst [vmem:[#allocation25_spill] sm:$0xff] %v1811_v47  ;;  %v1876_v47 = vld [vmem:[%s1588_s10 + $0xe0] sm:$0xff] }
  0x6b   : > { %536 = vst [vmem:[%s1654_s29 + $0x78] sm:$0xff] %v472_v17  ;;  %v418_v17 = vmul.f32 %v1597_v1, %v1834_v6 }
  0x6c   : > { %2886 = vst [vmem:[#allocation26_spill] sm:$0xff] %v1824_v57  ;;  %v1858_v57 = vld [vmem:[%s1588_s10 + $0xd8] sm:$0xff] }
  0x6d   : > { %537 = vst [vmem:[%s1654_s29 + $0x80] sm:$0xff] %v473_v25  ;;  %v1848_v25 = vmul.f32 %v1814_v49, %v1606_v4  ;;  %v1866_v4 = vmul.f32 %v1814_v49, %v1621_v10  ;;  %v1884_v10 = vmul.f32 %v1814_v49, %v1644_v21  ;;  %v1902_v21 = vmul.f32 %v1814_v49, %v1669_v30 }
  0x6e   : > { %2887 = vst [vmem:[#allocation27_spill] sm:$0xff] %v1834_v6  ;;  %v1862_v6 = vmul.f32 %v1814_v49, %v1618_v9  ;;  %v1880_v9 = vmul.f32 %v1814_v49, %v1632_v16  ;;  %v1898_v16 = vmul.f32 %v1814_v49, %v1659_v26  ;;  %v1916_v26 = vmul.f32 %v1814_v49, %v1682_v35 }
  0x6f   : > { %538 = vst [vmem:[%s1654_s29 + $0x88] sm:$0xff] %v474_v34  ;;  %v1853_v34 = vld [vmem:[%s1580_s23 + $0xb8] sm:$0xff]  ;;  %v1920_v30 = vmul.f32 %v1814_v49, %v1694_v40  ;;  %v1934_v35 = vmul.f32 %v1814_v49, %v1704_v44  ;;  %v1938_v40 = vmul.f32 %v1814_v49, %v1714_v48  ;;  %v1950_v44 = vmul.f32 %v1814_v49, %v1724_v52 }
  0x70   : > { %2888 = vst [vmem:[#allocation28_spill] sm:$0xff] %v1844_v22  ;;  %v420_v22 = vmul.f32 %v1597_v1, %v1858_v57  ;;  %v1954_v48 = vmul.f32 %v1814_v49, %v1736_v56  ;;  %v1969_v52 = vmul.f32 %v1814_v49, %v1756_v5 }
  0x71   : > { %539 = vst [vmem:[%s1654_s29 + $0x90] sm:$0xff] %v475_v41  ;;  %v480_v41 = vadd.f32 %v416_v55, %v1853_v34  ;;  %v1889_v55 = vld [vmem:[%s1580_s23 + $0xc8] sm:$0xff] }
  0x72   : > { %2889 = vst [vmem:[#allocation29_spill] sm:$0xff] %v1858_v57  ;;  %v421_v57 = vmul.f32 %v1597_v1, %v1876_v47 }
  0x73   : > { %540 = vst [vmem:[%s1654_s29 + $0x98] sm:$0xff] %v476_v51  ;;  %v481_v51 = vadd.f32 %v417_v63, %v1871_v45  ;;  %v1907_v63 = vld [vmem:[%s1580_s23 + $0xd0] sm:$0xff] }
  0x74   : > { %2890 = vst [vmem:[#allocation30_spill] sm:$0xff] %v1876_v47  ;;  %v422_v47 = vmul.f32 %v1597_v1, %v1894_v39 }
  0x75   : > { %541 = vst [vmem:[%s1654_s29 + $0xa0] sm:$0xff] %v477_v59  ;;  %v482_v59 = vadd.f32 %v418_v17, %v1889_v55  ;;  %v1925_v17 = vld [vmem:[%s1580_s23 + $0xd8] sm:$0xff] }
  0x76   : > { %2891 = vst [vmem:[#allocation31_spill] sm:$0xff] %v1894_v39  ;;  %v423_v39 = vmul.f32 %v1597_v1, %v1912_v31 }
  0x77   : > { %542 = vst [vmem:[%s1654_s29 + $0xa8] sm:$0xff] %v478_v11  ;;  %v483_v11 = vadd.f32 %v419_v37, %v1907_v63  ;;  %v292_v37 = vld [vmem:[%s1580_s23 + $0xe0] sm:$0xff] }
  0x78   : > { %2892 = vst [vmem:[#allocation32_spill] sm:$0xff] %v1912_v31  ;;  %v424_v31 = vmul.f32 %v1597_v1, %v1930_v23 }
  0x79   : > { %543 = vst [vmem:[%s1654_s29 + $0xb0] sm:$0xff] %v479_v29  ;;  %v484_v29 = vadd.f32 %v420_v22, %v1925_v17  ;;  %v293_v22 = vld [vmem:[%s1580_s23 + $0xe8] sm:$0xff] }
  0x7a   : > { %2893 = vst [vmem:[#allocation33_spill] sm:$0xff] %v1930_v23  ;;  %v1961_v23 = vld [vmem:[%s1588_s10 + $0x108] sm:$0xff]  ;;  %v486_v56 = vadd.f32 %v422_v47, %v293_v22  ;;  %v295_v47 = vld [vmem:[%s1580_s23 + $0xf8] sm:$0xff] }
  0x7b   : > { %544 = vst [vmem:[%s1654_s29 + $0xb8] sm:$0xff] %v480_v41  ;;  %v485_v41 = vadd.f32 %v421_v57, %v292_v37  ;;  %v294_v57 = vld [vmem:[%s1580_s23 + $0xf0] sm:$0xff]  ;;  %v488_v20 = vadd.f32 %v424_v31, %v295_v47  ;;  %v297_v31 = vld [vmem:[%s1580_s23 + $0x108] sm:$0xff] }
  0x7c   : > { %2894 = vst [vmem:[#allocation34_spill] sm:$0xff] %v1946_v15  ;;  %v1976_v15 = vld [vmem:[%s1588_s10 + $0x110] sm:$0xff]  ;;  %v487_v5 = vadd.f32 %v423_v39, %v294_v57  ;;  %v296_v39 = vld [vmem:[%s1580_s23 + $0x100] sm:$0xff] }
  0x7d   : > { %545 = vst [vmem:[%s1654_s29 + $0xc0] sm:$0xff] %v481_v51  ;;  %v426_v51 = vmul.f32 %v1597_v1, %v1961_v23  ;;  %v489_v36 = vadd.f32 %v425_v7, %v296_v39  ;;  %v298_v7 = vld [vmem:[%s1580_s23 + $0x110] sm:$0xff] }
  0x7e   : > { %2895 = vst [vmem:[#allocation35_spill] sm:$0xff] %v1961_v23  ;;  %v1991_v23 = vld [vmem:[%s1588_s10 + $0x118] sm:$0xff] }
  0x7f   : > { %546 = vst [vmem:[%s1654_s29 + $0xc8] sm:$0xff] %v482_v59  ;;  %v427_v59 = vmul.f32 %v1597_v1, %v1976_v15  ;;  %v490_v53 = vadd.f32 %v426_v51, %v297_v31 }
  0x80   : > { %2896 = vst [vmem:[#allocation36_spill] sm:$0xff] %v1976_v15  ;;  %v2006_v15 = vld [vmem:[%s1588_s10 + $0x120] sm:$0xff] }
  0x81   : > { %2897 = vst [vmem:[#allocation37_spill] sm:$0xff] %v1984_v60  ;;  %v2010_v60 = vmul.f32 %v1814_v49, %v1806_v43  ;;  %v2029_v43 = vmul.f32 %v1814_v49, %v1839_v14  ;;  %v491_v14 = vadd.f32 %v427_v59, %v298_v7 }
  0x82   : > { %547 = vst [vmem:[%s1654_s29 + $0xd0] sm:$0xff] %v483_v11  ;;  %v428_v11 = vmul.f32 %v1597_v1, %v1991_v23 }
  0x83   : > { %2898 = vst [vmem:[#allocation38_spill] sm:$0xff] %v1991_v23  ;;  %v2021_v23 = vld [vmem:[%s1588_s10 + $0x128] sm:$0xff] }
  0x84   : > { %2899 = vst [vmem:[#allocation39_spill] sm:$0xff] %v1999_v13  ;;  %v2025_v13 = vmul.f32 %v1814_v49, %v1829_v61  ;;  %v2044_v61 = vmul.f32 %v1814_v49, %v1871_v45 }
  0x85   : > { %548 = vst [vmem:[%s1654_s29 + $0xd8] sm:$0xff] %v484_v29  ;;  %v429_v29 = vmul.f32 %v1597_v1, %v2006_v15 }
  0x86   : > { %2900 = vst [vmem:[#allocation40_spill] sm:$0xff] %v2006_v15  ;;  %v2036_v15 = vld [vmem:[%s1588_s10 + $0x130] sm:$0xff] }
  0x87   : > { %2901 = vst [vmem:[#allocation41_spill] sm:$0xff] %v2014_v27  ;;  %v2040_v27 = vmul.f32 %v1814_v49, %v1853_v34  ;;  %v431_v51 = vmul.f32 %v1597_v1, %v2036_v15  ;;  %v2059_v34 = vmul.f32 %v1814_v49, %v1907_v63 }
  0x88   : > { %549 = vst [vmem:[%s1654_s29 + $0xe0] sm:$0xff] %v485_v41  ;;  %v430_v41 = vmul.f32 %v1597_v1, %v2021_v23 }
  0x89   : > { %2902 = vst [vmem:[#allocation42_spill] sm:$0xff] %v2021_v23  ;;  %v2051_v23 = vld [vmem:[%s1588_s10 + $0x138] sm:$0xff] }
  0x8a   : > { %2903 = vst [vmem:[#allocation43_spill] sm:$0xff] %v2029_v43  ;;  %v2055_v43 = vmul.f32 %v1814_v49, %v1889_v55  ;;  %v432_v59 = vmul.f32 %v1597_v1, %v2051_v23  ;;  %v2073_v55 = vmul.f32 %v1814_v49, %v292_v37 }
  0x8b   : > { %550 = vst [vmem:[%s1654_s29 + $0xe8] sm:$0xff] %v486_v56  ;;  %v299_v56 = vld [vmem:[%s1580_s23 + $0x118] sm:$0xff] }
  0x8c   : > { %2904 = vst [vmem:[#allocation44_spill] sm:$0xff] %v2036_v15  ;;  %v492_v45 = vadd.f32 %v428_v11, %v299_v56  ;;  %v2066_v15 = vld [vmem:[%s1588_s10 + $0x140] sm:$0xff] }
  0x8d   : > { %2905 = vst [vmem:[#allocation45_spill] sm:$0xff] %v2044_v61  ;;  %v2070_v61 = vmul.f32 %v1814_v49, %v1925_v17  ;;  %v433_v11 = vmul.f32 %v1597_v1, %v2066_v15  ;;  %v2086_v17 = vmul.f32 %v1814_v49, %v294_v57 }
  0x8e   : > { %551 = vst [vmem:[%s1654_s29 + $0xf0] sm:$0xff] %v487_v5  ;;  %v300_v5 = vld [vmem:[%s1580_s23 + $0x120] sm:$0xff] }
  0x8f   : > { %2906 = vst [vmem:[#allocation46_spill] sm:$0xff] %v2051_v23  ;;  %v493_v63 = vadd.f32 %v429_v29, %v300_v5  ;;  %v2083_v23 = vmul.f32 %v1814_v49, %v293_v22  ;;  %v2099_v22 = vmul.f32 %v1814_v49, %v296_v39 }
  0x90   : > { %2907 = vst [vmem:[#allocation47_spill] sm:$0xff] %v2055_v43  ;;  %v2303_v43 = vld [vmem:[%s1588_s10 + $0x1e0] sm:$0xff] }
  0x91   : > { %2908 = vst [vmem:[#allocation48_spill] sm:$0xff] %v2059_v34  ;;  %v2080_v34 = vld [vmem:[%s1588_s10 + $0x148] sm:$0xff] }
  0x92   : > { %552 = vst [vmem:[%s1654_s29 + $0xf8] sm:$0xff] %v488_v20  ;;  %v301_v20 = vld [vmem:[%s1580_s23 + $0x128] sm:$0xff]  ;;  %v434_v29 = vmul.f32 %v1597_v1, %v2080_v34 }
  0x93   : > { %2909 = vst [vmem:[#allocation49_spill] sm:$0xff] %v2066_v15  ;;  %v494_v37 = vadd.f32 %v430_v41, %v301_v20  ;;  %v2096_v15 = vmul.f32 %v1814_v49, %v295_v47  ;;  %v2112_v47 = vmul.f32 %v1814_v49, %v298_v7 }
  0x94   : > { %2910 = vst [vmem:[#allocation50_spill] sm:$0xff] %v2070_v61 }
  0x95   : > { %2911 = vst [vmem:[#allocation51_spill] sm:$0xff] %v2073_v55  ;;  %v2093_v55 = vld [vmem:[%s1588_s10 + $0x150] sm:$0xff] }
  0x96   : > { %553 = vst [vmem:[%s1654_s29 + $0x100] sm:$0xff] %v489_v36  ;;  %v302_v36 = vld [vmem:[%s1580_s23 + $0x130] sm:$0xff]  ;;  %v435_v41 = vmul.f32 %v1597_v1, %v2093_v55 }
  0x97   : > { %2912 = vst [vmem:[#allocation52_spill] sm:$0xff] %v2080_v34  ;;  %v495_v57 = vadd.f32 %v431_v51, %v302_v36  ;;  %v2109_v34 = vmul.f32 %v1814_v49, %v297_v31  ;;  %v2126_v31 = vmul.f32 %v1814_v49, %v300_v5 }
  0x98   : > { %2913 = vst [vmem:[#allocation53_spill] sm:$0xff] %v2083_v23 }
  0x99   : > { %2914 = vst [vmem:[#allocation54_spill] sm:$0xff] %v2086_v17  ;;  %v2106_v17 = vld [vmem:[%s1588_s10 + $0x158] sm:$0xff] }
  0x9a   : > { %554 = vst [vmem:[%s1654_s29 + $0x108] sm:$0xff] %v490_v53  ;;  %v303_v53 = vld [vmem:[%s1580_s23 + $0x138] sm:$0xff]  ;;  %v436_v51 = vmul.f32 %v1597_v1, %v2106_v17 }
  0x9b   : > { %2915 = vst [vmem:[#allocation55_spill] sm:$0xff] %v2093_v55  ;;  %v496_v39 = vadd.f32 %v432_v59, %v303_v53  ;;  %v2122_v55 = vmul.f32 %v1814_v49, %v299_v56  ;;  %v306_v59 = vld [vmem:[%s1580_s23 + $0x150] sm:$0xff]  ;;  %v2137_v56 = vmul.f32 %v1814_v49, %v301_v20 }
  0x9c   : > { %2916 = vst [vmem:[#allocation56_spill] sm:$0xff] %v2096_v15 }
  0x9d   : > { %2917 = vst [vmem:[#allocation57_spill] sm:$0xff] %v2099_v22  ;;  %v2119_v22 = vld [vmem:[%s1588_s10 + $0x160] sm:$0xff] }
  0x9e   : > { %555 = vst [vmem:[%s1654_s29 + $0x110] sm:$0xff] %v491_v14  ;;  %v304_v14 = vld [vmem:[%s1580_s23 + $0x140] sm:$0xff] }
  0x9f   : > { %2918 = vst [vmem:[#allocation58_spill] sm:$0xff] %v2106_v17  ;;  %v497_v7 = vadd.f32 %v433_v11, %v304_v14  ;;  %v2133_v17 = vld [vmem:[%s1588_s10 + $0x168] sm:$0xff]  ;;  %v307_v11 = vld [vmem:[%s1580_s23 + $0x158] sm:$0xff]  ;;  %v2154_v20 = vmul.f32 %v1814_v49, %v304_v14 }
  0xa0   : > { %2919 = vst [vmem:[#allocation59_spill] sm:$0xff] %v2109_v34  ;;  %v500_v14 = vadd.f32 %v436_v51, %v307_v11  ;;  %v2237_v34 = vld [vmem:[%s1588_s10 + $0x1b0] sm:$0xff] }
  0xa1   : > { %2920 = vst [vmem:[#allocation60_spill] sm:$0xff] %v2112_v47  ;;  %v437_v47 = vmul.f32 %v1597_v1, %v2119_v22 }
  0xa2   : > { %556 = vst [vmem:[%s1654_s29 + $0x118] sm:$0xff] %v492_v45  ;;  %v305_v45 = vld [vmem:[%s1580_s23 + $0x148] sm:$0xff] }
  0xa3   : > { %2921 = vst [vmem:[#allocation61_spill] sm:$0xff] %v2119_v22  ;;  %v498_v5 = vadd.f32 %v434_v29, %v305_v45  ;;  %v2147_v22 = vld [vmem:[%s1588_s10 + $0x170] sm:$0xff]  ;;  %v309_v29 = vld [vmem:[%s1580_s23 + $0x168] sm:$0xff] }
  0xa4   : > { %2922 = vst [vmem:[#allocation62_spill] sm:$0xff] %v2122_v55  ;;  %v438_v55 = vmul.f32 %v1597_v1, %v2133_v17 }
  0xa5   : > { %557 = vst [vmem:[%s1654_s29 + $0x120] sm:$0xff] %v493_v63  ;;  %v2140_v63 = vmul.f32 %v1814_v49, %v302_v36  ;;  %v499_v36 = vadd.f32 %v435_v41, %v306_v59  ;;  %v311_v41 = vld [vmem:[%s1580_s23 + $0x178] sm:$0xff] }
  0xa6   : > { %2923 = vst [vmem:[#allocation63_spill] sm:$0xff] %v2126_v31  ;;  %v308_v31 = vld [vmem:[%s1580_s23 + $0x160] sm:$0xff] }
  0xa7   : > { %2924 = vst [vmem:[#allocation64_spill] sm:$0xff] %v2133_v17  ;;  %v2161_v17 = vld [vmem:[%s1588_s10 + $0x178] sm:$0xff] }
  0xa8   : > { %558 = vst [vmem:[%s1654_s29 + $0x128] sm:$0xff] %v494_v37  ;;  %v2151_v37 = vmul.f32 %v1814_v49, %v303_v53  ;;  %v2168_v53 = vmul.f32 %v1814_v49, %v306_v59  ;;  %v313_v59 = vld [vmem:[%s1580_s23 + $0x188] sm:$0xff] }
  0xa9   : > { %2925 = vst [vmem:[#allocation65_spill] sm:$0xff] %v2137_v56  ;;  %v439_v56 = vmul.f32 %v1597_v1, %v2147_v22 }
  0xaa   : > { %2926 = vst [vmem:[#allocation66_spill] sm:$0xff] %v2140_v63  ;;  %v310_v63 = vld [vmem:[%s1580_s23 + $0x170] sm:$0xff] }
  0xab   : > { %2927 = vst [vmem:[#allocation67_spill] sm:$0xff] %v2147_v22  ;;  %v2175_v22 = vld [vmem:[%s1588_s10 + $0x180] sm:$0xff] }
  0xac   : > { %559 = vst [vmem:[%s1654_s29 + $0x130] sm:$0xff] %v495_v57  ;;  %v2165_v57 = vmul.f32 %v1814_v49, %v305_v45  ;;  %v501_v45 = vadd.f32 %v437_v47, %v308_v31  ;;  %v441_v51 = vmul.f32 %v1597_v1, %v2175_v22  ;;  %v2197_v47 = vmul.f32 %v1814_v49, %v309_v29 }
  0xad   : > { %2928 = vst [vmem:[#allocation68_spill] sm:$0xff] %v2151_v37  ;;  %v312_v37 = vld [vmem:[%s1580_s23 + $0x180] sm:$0xff] }
  0xae   : > { %2929 = vst [vmem:[#allocation69_spill] sm:$0xff] %v2154_v20  ;;  %v440_v20 = vmul.f32 %v1597_v1, %v2161_v17 }
  0xaf   : > { %2930 = vst [vmem:[#allocation70_spill] sm:$0xff] %v2161_v17  ;;  %v2188_v17 = vld [vmem:[%s1588_s10 + $0x188] sm:$0xff] }
  0xb0   : > { %560 = vst [vmem:[%s1654_s29 + $0x138] sm:$0xff] %v496_v39  ;;  %v2179_v39 = vmul.f32 %v1814_v49, %v307_v11  ;;  %v314_v11 = vld [vmem:[%s1580_s23 + $0x190] sm:$0xff] }
  0xb1   : > { %2931 = vst [vmem:[#allocation71_spill] sm:$0xff] %v2165_v57  ;;  %v2182_v57 = vmul.f32 %v1814_v49, %v308_v31  ;;  %v442_v31 = vmul.f32 %v1597_v1, %v2188_v17 }
  0xb2   : > { %2932 = vst [vmem:[#allocation72_spill] sm:$0xff] %v2168_v53  ;;  %v2191_v53 = vld [vmem:[%s1588_s10 + $0x190] sm:$0xff] }
  0xb3   : > { %2933 = vst [vmem:[#allocation73_spill] sm:$0xff] %v2175_v22  ;;  %v443_v22 = vmul.f32 %v1597_v1, %v2191_v53  ;;  %v506_v15 = vadd.f32 %v442_v31, %v313_v59  ;;  %v2272_v31 = vld [vmem:[%s1588_s10 + $0x1c8] sm:$0xff] }
  0xb4   : > { %561 = vst [vmem:[%s1654_s29 + $0x140] sm:$0xff] %v497_v7  ;;  %v502_v7 = vadd.f32 %v438_v55, %v309_v29  ;;  %v503_v55 = vadd.f32 %v439_v56, %v310_v63  ;;  %v2214_v29 = vmul.f32 %v1814_v49, %v311_v41  ;;  %v2225_v56 = vmul.f32 %v1814_v49, %v312_v37 }
  0xb5   : > { %2934 = vst [vmem:[#allocation74_spill] sm:$0xff] %v2179_v39  ;;  %v2221_v39 = vld [vmem:[%s1588_s10 + $0x1a0] sm:$0xff] }
  0xb6   : > { %2935 = vst [vmem:[#allocation75_spill] sm:$0xff] %v2182_v57  ;;  %v2205_v57 = vld [vmem:[%s1588_s10 + $0x198] sm:$0xff] }
  0xb7   : > { %2936 = vst [vmem:[#allocation76_spill] sm:$0xff] %v2188_v17  ;;  %v315_v17 = vld [vmem:[%s1580_s23 + $0x198] sm:$0xff] }
  0xb8   : > { %2937 = vst [vmem:[#allocation77_spill] sm:$0xff] %v2191_v53  ;;  %v444_v53 = vmul.f32 %v1597_v1, %v2205_v57 }
  0xb9   : > { %562 = vst [vmem:[%s1654_s29 + $0x148] sm:$0xff] %v498_v5  ;;  %v2211_v5 = vmul.f32 %v1814_v49, %v310_v63  ;;  %v2228_v63 = vmul.f32 %v1814_v49, %v313_v59  ;;  %v320_v59 = vld [vmem:[%s1580_s23 + $0x1c0] sm:$0xff] }
  0xba   : > { %2938 = vst [vmem:[#allocation78_spill] sm:$0xff] %v2197_v47  ;;  %v316_v47 = vld [vmem:[%s1580_s23 + $0x1a0] sm:$0xff] }
  0xbb   : > { %2939 = vst [vmem:[#allocation79_spill] sm:$0xff] %v2205_v57  ;;  %v2234_v57 = vld [vmem:[%s1588_s10 + $0x1a8] sm:$0xff]  ;;  %v2263_v23 = vmul.f32 %v1814_v49, %v316_v47 }
  0xbc   : > { %563 = vst [vmem:[%s1654_s29 + $0x150] sm:$0xff] %v499_v36  ;;  %v504_v36 = vadd.f32 %v440_v20, %v311_v41  ;;  %v2241_v20 = vmul.f32 %v1814_v49, %v314_v11  ;;  %v446_v41 = vmul.f32 %v1597_v1, %v2234_v57 }
  0xbd   : > { %2940 = vst [vmem:[#allocation80_spill] sm:$0xff] %v2211_v5  ;;  %v317_v5 = vld [vmem:[%s1580_s23 + $0x1a8] sm:$0xff] }
  0xbe   : > { %2941 = vst [vmem:[#allocation81_spill] sm:$0xff] %v2214_v29  ;;  %v445_v29 = vmul.f32 %v1597_v1, %v2221_v39 }
  0xbf   : > { %2942 = vst [vmem:[#allocation82_spill] sm:$0xff] %v2221_v39  ;;  %v447_v39 = vmul.f32 %v1597_v1, %v2237_v34 }
  0xc0   : > { %564 = vst [vmem:[%s1654_s29 + $0x158] sm:$0xff] %v500_v14  ;;  %v505_v14 = vadd.f32 %v441_v51, %v312_v37  ;;  %v2253_v37 = vmul.f32 %v1814_v49, %v315_v17  ;;  %v319_v51 = vld [vmem:[%s1580_s23 + $0x1b8] sm:$0xff] }
  0xc1   : > { %2943 = vst [vmem:[#allocation83_spill] sm:$0xff] %v2225_v56  ;;  %v2249_v56 = vld [vmem:[%s1588_s10 + $0x1b8] sm:$0xff] }
  0xc2   : > { %2944 = vst [vmem:[#allocation84_spill] sm:$0xff] %v2228_v63  ;;  %v318_v63 = vld [vmem:[%s1580_s23 + $0x1b0] sm:$0xff] }
  0xc3   : > { %2945 = vst [vmem:[#allocation85_spill] sm:$0xff] %v2234_v57  ;;  %v448_v57 = vmul.f32 %v1597_v1, %v2249_v56 }
  0xc4   : > { %2946 = vst [vmem:[#allocation86_spill] sm:$0xff] %v2237_v34  ;;  %v508_v34 = vadd.f32 %v444_v53, %v315_v17  ;;  %v2279_v17 = vmul.f32 %v1814_v49, %v318_v63  ;;  %v321_v53 = vld [vmem:[%s1580_s23 + $0x1c8] sm:$0xff] }
  0xc5   : > { %565 = vst [vmem:[%s1654_s29 + $0x160] sm:$0xff] %v501_v45  ;;  %v507_v45 = vadd.f32 %v443_v22, %v314_v11  ;;  %v2266_v22 = vmul.f32 %v1814_v49, %v317_v5  ;;  %v2275_v11 = vld [vmem:[%s1588_s10 + $0x1d0] sm:$0xff]  ;;  %v512_v61 = vadd.f32 %v448_v57, %v319_v51 }
  0xc6   : > { %2947 = vst [vmem:[#allocation87_spill] sm:$0xff] %v2241_v20  ;;  %v2259_v20 = vld [vmem:[%s1588_s10 + $0x1c0] sm:$0xff] }
  0xc7   : > { %2948 = vst [vmem:[#allocation88_spill] sm:$0xff] %v2249_v56  ;;  %v450_v56 = vmul.f32 %v1597_v1, %v2272_v31 }
  0xc8   : > { %566 = vst [vmem:[%s1654_s29 + $0x168] sm:$0xff] %v502_v7  ;;  %v449_v7 = vmul.f32 %v1597_v1, %v2259_v20 }
  0xc9   : > { %2949 = vst [vmem:[#allocation89_spill] sm:$0xff] %v2253_v37  ;;  %v324_v37 = vld [vmem:[%s1580_s23 + $0x1e0] sm:$0xff] }
  0xca   : > { %2950 = vst [vmem:[#allocation90_spill] sm:$0xff] %v2259_v20  ;;  %v451_v20 = vmul.f32 %v1597_v1, %v2275_v11 }
  0xcb   : > { %567 = vst [vmem:[%s1654_s29 + $0x170] sm:$0xff] %v503_v55  ;;  %v509_v55 = vadd.f32 %v445_v29, %v316_v47  ;;  %v511_v47 = vadd.f32 %v447_v39, %v318_v63  ;;  %v2292_v29 = vmul.f32 %v1814_v49, %v319_v51  ;;  %v2308_v39 = vstv %s2207_s26  ;;  %s1333_s26 = scalar_lea.hbm %s2819_s3, 2048 }
  0xcc   : > { %2951 = vst [vmem:[#allocation91_spill] sm:$0xff] %v2263_v23  ;;  %v2288_v23 = vld [vmem:[%s1588_s10 + $0x1d8] sm:$0xff]  ;;  %v513_v63 = vadd.f32 %v449_v7, %v320_v59  ;;  %v514_v51 = vadd.f32 %v450_v56, %v321_v53  ;;  %v326_v7 = vld [vmem:[%s1580_s23 + $0x1f0] sm:$0xff] }
  0xcd   : > { %2952 = vst [vmem:[#allocation92_spill] sm:$0xff] %v2266_v22  ;;  %v322_v22 = vld [vmem:[%s1580_s23 + $0x1d0] sm:$0xff]  ;;  %v327_v56 = vld [vmem:[%s1580_s23 + $0x1f8] sm:$0xff] }
  0xce   : > { %2953 = vst [vmem:[#allocation93_spill] sm:$0xff] %v2272_v31  ;;  %v452_v31 = vmul.f32 %v1597_v1, %v2288_v23  ;;  %v2318_v57 = vmul.f32 %v1814_v49, %v322_v22 }
  0xcf   : > { %2954 = vst [vmem:[#allocation94_spill] sm:$0xff] %v2275_v11  ;;  %v2300_v11 = vmul.f32 %v1814_v49, %v320_v59  ;;  %v2331_v59 = vld [vmem:[%s1588_s10 + $0x1e8] sm:$0xff] }
  0xd0   : > { %568 = vst [vmem:[%s1654_s29 + $0x178] sm:$0xff] %v504_v36  ;;  %v510_v36 = vadd.f32 %v446_v41, %v317_v5  ;;  %v2311_v5 = vstv %s2193_s25  ;;  %v325_v41 = vld [vmem:[%s1580_s23 + $0x1e8] sm:$0xff] }
  0xd1   : > { %2955 = vst [vmem:[#allocation95_spill] sm:$0xff] %v2279_v17  ;;  %v323_v17 = vld [vmem:[%s1580_s23 + $0x1d8] sm:$0xff]  ;;  %s1010_s23 = sshll.u32 %s2424_s9, 4  ;;  %s2768_s23 = int_to_ptr.vmem [resolvable:$true] %s1010_s23 }
  0xd2   : > { %2956 = vst [vmem:[#allocation96_spill] sm:$0xff] %v2288_v23  ;;  %v515_v23 = vadd.f32 %v451_v20, %v322_v22  ;;  %v651_v20 = vadd.f32 %v2308_v39, %v1848_v25  ;;  %v716_v22 = vmul.f32 %v2311_v5, %v1595_v0  ;;  %v2357_v0 = vmul.f32 %v1814_v49, %v326_v7 }
  0xd3   : > { %569 = vst [vmem:[%s1654_s29 + $0x180] sm:$0xff] %v505_v14  ;;  %v453_v14 = vmul.f32 %v1597_v1, %v2303_v43 }
  0xd4   : > { %570 = vst [vmem:[%s1654_s29 + $0x188] sm:$0xff] %v506_v15  ;;  %v2315_v15 = vmul.f32 %v1814_v49, %v321_v53  ;;  %v2347_v53 = vmul.f32 %v1814_v49, %v325_v41 }
  0xd5   : > { %2957 = vst [vmem:[#allocation97_spill] sm:$0xff] %v2300_v11  ;;  %v2325_v11 = vmul.f32 %v1814_v49, %v323_v17  ;;  %v517_v25 = vadd.f32 %v453_v14, %v324_v37  ;;  %v780_v14 = vadd.f32 %v716_v22, %v651_v20 }
  0xd6   : > { %2958 = vst [vmem:[#allocation98_spill] sm:$0xff] %v2303_v43  ;;  %v454_v43 = vmul.f32 %v1597_v1, %v2331_v59 }
  0xd7   : > { %571 = vst [vmem:[%s1654_s29 + $0x190] sm:$0xff] %v507_v45  ;;  %v2328_v45 = vmul.f32 %v1814_v49, %v324_v37  ;;  %v654_v37 = vadd.f32 %v2308_v39, %v1880_v9  ;;  %v656_v9 = vadd.f32 %v2308_v39, %v1898_v16  ;;  %v658_v16 = vadd.f32 %v2308_v39, %v1916_v26 }
  0xd8   : > { %2959 = vst [vmem:[#allocation99_spill] sm:$0xff] %v2318_v57  ;;  %v516_v57 = vadd.f32 %v452_v31, %v323_v17  ;;  %v717_v17 = vmul.f32 %v2311_v5, %v1600_v2  ;;  %v660_v26 = vadd.f32 %v2308_v39, %v1934_v35  ;;  %v662_v35 = vadd.f32 %v2308_v39, %v1950_v44 }
  0xd9   : > { %572 = vst [vmem:[%s1654_s29 + $0x198] sm:$0xff] %v508_v34  ;;  %v2338_v34 = vld [vmem:[%s1588_s10 + $0x1f0] sm:$0xff] }
  0xda   : > { %2960 = vst [vmem:[#allocation100_spill] sm:$0xff] %v2331_v59  ;;  %v455_v31 = vmul.f32 %v1597_v1, %v2338_v34  ;;  %v653_v59 = vadd.f32 %v2308_v39, %v1866_v4  ;;  %v518_v4 = vadd.f32 %v454_v43, %v325_v41 }
  0xdb   : > { %573 = vst [vmem:[%s1654_s29 + $0x1a0] sm:$0xff] %v509_v55  ;;  %v652_v55 = vadd.f32 %v2308_v39, %v1862_v6  ;;  %v2370_v6 = vmul.f32 %v1814_v49, %v327_v56 }
  0xdc   : > { %2961 = vst [vmem:[#allocation101_spill] sm:$0xff] %v2338_v34  ;;  %v718_v34 = vmul.f32 %v2311_v5, %v1603_v3  ;;  %v655_v3 = vadd.f32 %v2308_v39, %v1884_v10  ;;  %v519_v43 = vadd.f32 %v455_v31, %v326_v7  ;;  %v657_v10 = vadd.f32 %v2308_v39, %v1902_v21 }
  0xdd   : > { %574 = vst [vmem:[%s1654_s29 + $0x1a8] sm:$0xff] %v510_v36  ;;  %v2360_v36 = vld [vmem:[%s1588_s10 + $0x1f8] sm:$0xff]  ;;  %v781_v49 = vadd.f32 %v717_v17, %v652_v55  ;;  %v659_v21 = vadd.f32 %v2308_v39, %v1920_v30  ;;  %v661_v30 = vadd.f32 %v2308_v39, %v1938_v40  ;;  %v663_v31 = vadd.f32 %v2308_v39, %v1954_v48  ;;  %s974_s10 = scalar_lea.sflag [#allocation6], %s1573_s6 }
  0xde   : > { %575 = vst [vmem:[%s1654_s29 + $0x1b0] sm:$0xff] %v511_v47  ;;  %v456_v2 = vmul.f32 %v1597_v1, %v2360_v36  ;;  %v719_v47 = vmul.f32 %v2311_v5, %v1615_v8  ;;  %v2383_v1 = vstv %s2305_s28  ;;  %v721_v8 = vmul.f32 %v2311_v5, %v1637_v18 }
  0xdf   : > { %576 = vst [vmem:[%s1654_s29 + $0x1b8] sm:$0xff] %v512_v61  ;;  %v720_v61 = vmul.f32 %v2311_v5, %v1626_v12  ;;  %v722_v12 = vmul.f32 %v2311_v5, %v1640_v19  ;;  %v723_v18 = vmul.f32 %v2311_v5, %v1651_v24  ;;  %v724_v19 = vmul.f32 %v2311_v5, %v1664_v28 }
  0xe0   : > { %577 = vst [vmem:[%s1654_s29 + $0x1c0] sm:$0xff] %v513_v63  ;;  %v782_v63 = vadd.f32 %v718_v34, %v653_v59  ;;  %v520_v41 = vadd.f32 %v456_v2, %v327_v56  ;;  %v785_v7 = vadd.f32 %v721_v8, %v656_v9  ;;  %v725_v24 = vmul.f32 %v2311_v5, %v1674_v32 }
  0xe1   : > { %578 = vst [vmem:[%s1654_s29 + $0x1c8] sm:$0xff] %v514_v51  ;;  %v783_v51 = vadd.f32 %v719_v47, %v654_v37  ;;  %v784_v59 = vadd.f32 %v720_v61, %v655_v3  ;;  %v786_v56 = vadd.f32 %v722_v12, %v657_v10  ;;  %v726_v28 = vmul.f32 %v2311_v5, %v1677_v33 }
  0xe2   : > { %579 = vst [vmem:[%s1654_s29 + $0x1d0] sm:$0xff] %v515_v23  ;;  %v845_v23 = vadd.f32 %v2383_v1, %v780_v14  ;;  %v847_v34 = vadd.f32 %v2383_v1, %v782_v63  ;;  %v787_v22 = vadd.f32 %v723_v18, %v658_v16  ;;  %v727_v32 = vmul.f32 %v2311_v5, %v1689_v38  ;;  %v2965_v63 = vld [vmem:[#allocation19_spill] sm:$0xff]  ;;  %v2967_v18 = vld [vmem:[#allocation20_spill] sm:$0xff] }
  0xe3   : > { %580 = vst [vmem:[%s1654_s29 + $0x1d8] sm:$0xff] %v516_v57  ;;  %v846_v57 = vadd.f32 %v2383_v1, %v781_v49  ;;  %v848_v20 = vadd.f32 %v2383_v1, %v783_v51  ;;  %v849_v40 = vadd.f32 %v2383_v1, %v784_v59  ;;  %v788_v33 = vadd.f32 %v724_v19, %v659_v21  ;;  %v2966_v51 = vld [vmem:[#allocation39_spill] sm:$0xff]  ;;  %v2968_v19 = vld [vmem:[#allocation21_spill] sm:$0xff] }
  0xe4   : > { %581 = vst [vmem:[%s1654_s29 + $0x1e0] sm:$0xff] %v517_v25  ;;  %v728_v55 = vmul.f32 %v2311_v5, %v1699_v42  ;;  %v850_v38 = vadd.f32 %v2383_v1, %v785_v7  ;;  %v789_v44 = vadd.f32 %v725_v24, %v660_v26  ;;  %v664_v17 = vadd.f32 %v2308_v39, %v1965_v62  ;;  %v2969_v24 = vld [vmem:[#allocation41_spill] sm:$0xff] }
  0xe5   : > { %582 = vst [vmem:[%s1654_s29 + $0x1e8] sm:$0xff] %v518_v4  ;;  %v729_v25 = vmul.f32 %v2311_v5, %v1709_v46  ;;  %v851_v2 = vadd.f32 %v2383_v1, %v786_v56  ;;  %v790_v37 = vadd.f32 %v726_v28, %v661_v30  ;;  %v665_v48 = vadd.f32 %v2308_v39, %v1969_v52  ;;  %v2962_v46 = vld [vmem:[#allocation17_spill] sm:$0xff]  ;;  %v2970_v56 = vld [vmem:[#allocation22_spill] sm:$0xff] }
  0xe6   : > { %583 = vst [vmem:[%s1654_s29 + $0x1f0] sm:$0xff] %v519_v43  ;;  %v730_v42 = vmul.f32 %v2311_v5, %v1719_v50  ;;  %v852_v47 = vadd.f32 %v2383_v1, %v787_v22  ;;  %v791_v4 = vadd.f32 %v727_v32, %v662_v35  ;;  %v666_v62 = vadd.f32 %v2308_v39, %v1980_v58  ;;  %v2963_v52 = vld [vmem:[#allocation37_spill] sm:$0xff]  ;;  %v2964_v50 = vld [vmem:[#allocation18_spill] sm:$0xff]  ;;  %v2971_v22 = vld [vmem:[#allocation23_spill] sm:$0xff] }
  0xe7   : > { %584 = vst [vmem:[%s1654_s29 + $0x1f8] sm:$0xff] %v520_v41  ;;  %v731_v14 = vmul.f32 %v2311_v5, %v2962_v46  ;;  %v853_v3 = vadd.f32 %v2383_v1, %v788_v33  ;;  %v792_v61 = vadd.f32 %v728_v55, %v663_v31  ;;  %v667_v49 = vadd.f32 %v2308_v39, %v2963_v52  ;;  %v2972_v33 = vld [vmem:[#allocation43_spill] sm:$0xff]  ;;  %v2973_v55 = vld [vmem:[#allocation24_spill] sm:$0xff]  ;;  %s1329_s29 = scalar_lea.hbm %s1328_s11, 512 }
  0xe8   : > { %909 = vst [vmem:[%s2424_s9] sm:$0xff] %v845_v23  ;;  %v732_v9 = vmul.f32 %v2311_v5, %v2964_v50  ;;  %v854_v8 = vadd.f32 %v2383_v1, %v789_v44  ;;  %v793_v43 = vadd.f32 %v729_v25, %v664_v17  ;;  %v668_v58 = vadd.f32 %v2308_v39, %v1995_v54  ;;  %v2974_v25 = vld [vmem:[#allocation25_spill] sm:$0xff]  ;;  %p1330_p6 = scmp.ne.s32.totalorder %s1328_s11, %s1329_s29  ;;  %p1335_p1 = scmp.lt.s32.totalorder %s1333_s26, %s1329_s29 }
  0xe9   : > { %910 = vst [vmem:[%s2424_s9 + $0x8] sm:$0xff] %v846_v57  ;;  %v733_v10 = vmul.f32 %v2311_v5, %v2965_v63  ;;  %v855_v12 = vadd.f32 %v2383_v1, %v790_v37  ;;  %v794_v41 = vadd.f32 %v730_v42, %v665_v48  ;;  %v669_v16 = vadd.f32 %v2308_v39, %v2966_v51  ;;  %v2975_v42 = vld [vmem:[#allocation45_spill] sm:$0xff] }
  0xea   : > { %911 = vst [vmem:[%s2424_s9 + $0x10] sm:$0xff] %v847_v34  ;;  %v734_v23 = vmul.f32 %v2311_v5, %v2967_v18  ;;  %v856_v59 = vadd.f32 %v2383_v1, %v791_v4  ;;  %v795_v21 = vadd.f32 %v731_v14, %v666_v62  ;;  %v670_v54 = vadd.f32 %v2308_v39, %v2010_v60  ;;  %v2976_v4 = vld [vmem:[#allocation26_spill] sm:$0xff]  ;;  %v2982_v51 = vld [vmem:[#allocation29_spill] sm:$0xff]  ;;  %p1331_p12 = pnand %p1330_p6, %p1501_p10  ;;  %p1336_p3 = por %p1335_p1, %p1334_p9 }
  0xeb   : > { %912 = vst [vmem:[%s2424_s9 + $0x18] sm:$0xff] %v848_v20  ;;  %v735_v57 = vmul.f32 %v2311_v5, %v2968_v19  ;;  %v857_v7 = vadd.f32 %v2383_v1, %v792_v61  ;;  %v796_v26 = vadd.f32 %v732_v9, %v667_v49  ;;  %v671_v34 = vadd.f32 %v2308_v39, %v2969_v24  ;;  %v2978_v61 = vld [vmem:[#allocation27_spill] sm:$0xff]  ;;  %v2979_v9 = vld [vmem:[#allocation48_spill] sm:$0xff] }
  0xec   : > { %913 = vst [vmem:[%s2424_s9 + $0x20] sm:$0xff] %v849_v40  ;;  %v736_v30 = vmul.f32 %v2311_v5, %v2970_v56  ;;  %v858_v28 = vadd.f32 %v2383_v1, %v793_v43  ;;  %v797_v20 = vadd.f32 %v733_v10, %v668_v58  ;;  %v672_v60 = vadd.f32 %v2308_v39, %v2025_v13  ;;  %v2980_v43 = vld [vmem:[#allocation28_spill] sm:$0xff]  ;;  %p1332_p2 = pneg %p1331_p12 }
  0xed   : > { %914 = vst [vmem:[%s2424_s9 + $0x28] sm:$0xff] %v850_v38  ;;  %v737_v35 = vmul.f32 %v2311_v5, %v2971_v22  ;;  %v859_v32 = vadd.f32 %v2383_v1, %v794_v41  ;;  %v798_v40 = vadd.f32 %v734_v23, %v669_v16  ;;  %v673_v31 = vadd.f32 %v2308_v39, %v2972_v33  ;;  %v2988_v22 = vld [vmem:[#allocation32_spill] sm:$0xff] }
  0xee   : > { %915 = vst [vmem:[%s2424_s9 + $0x30] sm:$0xff] %v851_v2  ;;  %v738_v38 = vmul.f32 %v2311_v5, %v2973_v55  ;;  %v860_v44 = vadd.f32 %v2383_v1, %v795_v21  ;;  %v799_v17 = vadd.f32 %v735_v57, %v670_v54  ;;  %v674_v13 = vadd.f32 %v2308_v39, %v2040_v27  ;;  %v2977_v27 = vld [vmem:[#allocation47_spill] sm:$0xff]  ;;  %v2984_v54 = vld [vmem:[#allocation30_spill] sm:$0xff]  ;;  %v2989_v33 = vld [vmem:[#allocation56_spill] sm:$0xff]  ;;  %p1337_p13 = pnand %p1336_p3, %p1332_p2 }
  0xef   : > { %916 = vst [vmem:[%s2424_s9 + $0x38] sm:$0xff] %v852_v47  ;;  %v739_v2 = vmul.f32 %v2311_v5, %v2974_v25  ;;  %v861_v37 = vadd.f32 %v2383_v1, %v796_v26  ;;  %v800_v48 = vadd.f32 %v736_v30, %v671_v34  ;;  %v675_v47 = vadd.f32 %v2308_v39, %v2975_v42  ;;  %v2985_v26 = vld [vmem:[#allocation53_spill] sm:$0xff]  ;;  %v2986_v34 = vld [vmem:[#allocation31_spill] sm:$0xff] }
  0xf0   : > { %917 = vst [vmem:[%s2424_s9 + $0x40] sm:$0xff] %v853_v3  ;;  %v740_v62 = vmul.f32 %v2311_v5, %v2976_v4  ;;  %v862_v46 = vadd.f32 %v2383_v1, %v797_v20  ;;  %v801_v14 = vadd.f32 %v737_v35, %v672_v60  ;;  %v676_v3 = vadd.f32 %v2308_v39, %v2977_v27  ;;  %v2987_v20 = vld [vmem:[#allocation54_spill] sm:$0xff]  ;;  %v2990_v55 = vld [vmem:[#allocation33_spill] sm:$0xff] }
  0xf1   : > { %918 = vst [vmem:[%s2424_s9 + $0x48] sm:$0xff] %v854_v8  ;;  %v741_v52 = vmul.f32 %v2311_v5, %v2978_v61  ;;  %v863_v49 = vadd.f32 %v2383_v1, %v798_v40  ;;  %v802_v50 = vadd.f32 %v738_v38, %v673_v31  ;;  %v677_v8 = vadd.f32 %v2308_v39, %v2979_v9 }
  0xf2   : > { %919 = vst [vmem:[%s2424_s9 + $0x50] sm:$0xff] %v855_v12  ;;  %v742_v58 = vmul.f32 %v2311_v5, %v2980_v43  ;;  %v864_v63 = vadd.f32 %v2383_v1, %v799_v17  ;;  %v803_v10 = vadd.f32 %v739_v2, %v674_v13  ;;  %v2981_v12 = vld [vmem:[#allocation50_spill] sm:$0xff]  ;;  %v743_v16 = vmul.f32 %v2311_v5, %v2982_v51  ;;  %v2991_v13 = vld [vmem:[#allocation57_spill] sm:$0xff] }
  0xf3   : > { %920 = vst [vmem:[%s2424_s9 + $0x58] sm:$0xff] %v856_v59  ;;  %v678_v41 = vadd.f32 %v2308_v39, %v2981_v12  ;;  %v865_v18 = vadd.f32 %v2383_v1, %v800_v48  ;;  %v804_v23 = vadd.f32 %v740_v62, %v675_v47  ;;  %v2983_v59 = vld [vmem:[#allocation51_spill] sm:$0xff]  ;;  %v744_v19 = vmul.f32 %v2311_v5, %v2984_v54  ;;  %v2992_v2 = vld [vmem:[#allocation34_spill] sm:$0xff] }
  0xf4   : > { %921 = vst [vmem:[%s2424_s9 + $0x60] sm:$0xff] %v857_v7  ;;  %v679_v21 = vadd.f32 %v2308_v39, %v2983_v59  ;;  %v866_v57 = vadd.f32 %v2383_v1, %v801_v14  ;;  %v805_v7 = vadd.f32 %v741_v52, %v676_v3  ;;  %v680_v24 = vadd.f32 %v2308_v39, %v2985_v26  ;;  %v2993_v47 = vld [vmem:[#allocation59_spill] sm:$0xff]  ;;  %v2995_v3 = vld [vmem:[#allocation60_spill] sm:$0xff] }
  0xf5   : > { %922 = vst [vmem:[%s2424_s9 + $0x68] sm:$0xff] %v858_v28  ;;  %v745_v56 = vmul.f32 %v2311_v5, %v2986_v34  ;;  %v867_v30 = vadd.f32 %v2383_v1, %v802_v50  ;;  %v806_v28 = vadd.f32 %v742_v58, %v677_v8  ;;  %v681_v60 = vadd.f32 %v2308_v39, %v2987_v20  ;;  %v2994_v62 = vld [vmem:[#allocation35_spill] sm:$0xff]  ;;  %v2996_v52 = vld [vmem:[#allocation36_spill] sm:$0xff]  ;;  %v2997_v8 = vld [vmem:[#allocation62_spill] sm:$0xff] }
  0xf6   : > { %923 = vst [vmem:[%s2424_s9 + $0x70] sm:$0xff] %v859_v32  ;;  %v746_v35 = vmul.f32 %v2311_v5, %v2988_v22  ;;  %v868_v32 = vadd.f32 %v2383_v1, %v803_v10  ;;  %v807_v40 = vadd.f32 %v743_v16, %v678_v41  ;;  %v682_v31 = vadd.f32 %v2308_v39, %v2989_v33  ;;  %v2998_v58 = vld [vmem:[#allocation38_spill] sm:$0xff]  ;;  %v2999_v41 = vld [vmem:[#allocation63_spill] sm:$0xff]  ;;  %v3000_v16 = vld [vmem:[#allocation40_spill] sm:$0xff] }
  0xf7   : > { %924 = vst [vmem:[%s2424_s9 + $0x78] sm:$0xff] %v860_v44  ;;  %v747_v38 = vmul.f32 %v2311_v5, %v2990_v55  ;;  %v869_v44 = vadd.f32 %v2383_v1, %v804_v23  ;;  %v808_v17 = vadd.f32 %v744_v19, %v679_v21  ;;  %v683_v25 = vadd.f32 %v2308_v39, %v2991_v13  ;;  %v3001_v21 = vld [vmem:[#allocation65_spill] sm:$0xff]  ;;  %v3002_v19 = vld [vmem:[#allocation42_spill] sm:$0xff] }
  0xf8   : > { %925 = vst [vmem:[%s2424_s9 + $0x80] sm:$0xff] %v861_v37  ;;  %v748_v37 = vmul.f32 %v2311_v5, %v2992_v2  ;;  %v870_v48 = vadd.f32 %v2383_v1, %v805_v7  ;;  %v809_v42 = vadd.f32 %v745_v56, %v680_v24  ;;  %v684_v4 = vadd.f32 %v2308_v39, %v2993_v47  ;;  %v3003_v24 = vld [vmem:[#allocation66_spill] sm:$0xff]  ;;  %v3004_v56 = vld [vmem:[#allocation44_spill] sm:$0xff] }
  0xf9   : > { %926 = vst [vmem:[%s2424_s9 + $0x88] sm:$0xff] %v862_v46  ;;  %v749_v46 = vmul.f32 %v2311_v5, %v2994_v62  ;;  %v871_v14 = vadd.f32 %v2383_v1, %v806_v28  ;;  %v810_v27 = vadd.f32 %v746_v35, %v681_v60  ;;  %v685_v61 = vadd.f32 %v2308_v39, %v2995_v3  ;;  %v3005_v60 = vld [vmem:[#allocation68_spill] sm:$0xff]  ;;  %v3006_v35 = vld [vmem:[#allocation46_spill] sm:$0xff] }
  0xfa   : > { %927 = vst [vmem:[%s2424_s9 + $0x90] sm:$0xff] %v863_v49  ;;  %v750_v49 = vmul.f32 %v2311_v5, %v2996_v52  ;;  %v872_v50 = vadd.f32 %v2383_v1, %v807_v40  ;;  %v811_v9 = vadd.f32 %v747_v38, %v682_v31  ;;  %v686_v43 = vadd.f32 %v2308_v39, %v2997_v8  ;;  %v3007_v31 = vld [vmem:[#allocation69_spill] sm:$0xff] }
  0xfb   : > { %928 = vst [vmem:[%s2424_s9 + $0x98] sm:$0xff] %v864_v63  ;;  %v751_v63 = vmul.f32 %v2311_v5, %v2998_v58  ;;  %v873_v10 = vadd.f32 %v2383_v1, %v808_v17  ;;  %v812_v12 = vadd.f32 %v748_v37, %v683_v25  ;;  %v687_v51 = vadd.f32 %v2308_v39, %v2999_v41  ;;  %v3008_v38 = vld [vmem:[#allocation49_spill] sm:$0xff]  ;;  %v3009_v25 = vld [vmem:[#allocation71_spill] sm:$0xff]  ;;  %v3010_v37 = vld [vmem:[#allocation52_spill] sm:$0xff] }
  0xfc   : > { %929 = vst [vmem:[%s2424_s9 + $0xa0] sm:$0xff] %v865_v18  ;;  %v752_v18 = vmul.f32 %v2311_v5, %v3000_v16  ;;  %v874_v23 = vadd.f32 %v2383_v1, %v809_v42  ;;  %v813_v59 = vadd.f32 %v749_v46, %v684_v4  ;;  %v688_v54 = vadd.f32 %v2308_v39, %v3001_v21  ;;  %v3011_v4 = vld [vmem:[#allocation72_spill] sm:$0xff]  ;;  %v3012_v46 = vld [vmem:[#allocation55_spill] sm:$0xff] }
  0xfd   : > { %930 = vst [vmem:[%s2424_s9 + $0xa8] sm:$0xff] %v866_v57  ;;  %v753_v57 = vmul.f32 %v2311_v5, %v3002_v19  ;;  %v875_v7 = vadd.f32 %v2383_v1, %v810_v27  ;;  %v814_v26 = vadd.f32 %v750_v49, %v685_v61  ;;  %v689_v34 = vadd.f32 %v2308_v39, %v3003_v24  ;;  %v3013_v61 = vld [vmem:[#allocation74_spill] sm:$0xff] }
  0xfe   : > { %931 = vst [vmem:[%s2424_s9 + $0xb0] sm:$0xff] %v867_v30  ;;  %v754_v30 = vmul.f32 %v2311_v5, %v3004_v56  ;;  %v876_v28 = vadd.f32 %v2383_v1, %v811_v9  ;;  %v815_v20 = vadd.f32 %v751_v63, %v686_v43  ;;  %v690_v22 = vadd.f32 %v2308_v39, %v3005_v60  ;;  %v3014_v49 = vld [vmem:[#allocation58_spill] sm:$0xff]  ;;  %v3015_v43 = vld [vmem:[#allocation75_spill] sm:$0xff]  ;;  %v3016_v63 = vld [vmem:[#allocation61_spill] sm:$0xff] }
  0xff   : > { %932 = vst [vmem:[%s2424_s9 + $0xb8] sm:$0xff] %v868_v32  ;;  %v755_v32 = vmul.f32 %v2311_v5, %v3006_v35  ;;  %v877_v40 = vadd.f32 %v2383_v1, %v812_v12  ;;  %v816_v33 = vadd.f32 %v752_v18, %v687_v51  ;;  %v691_v55 = vadd.f32 %v2308_v39, %v3007_v31  ;;  %v3017_v51 = vld [vmem:[#allocation78_spill] sm:$0xff]  ;;  %v3018_v18 = vld [vmem:[#allocation64_spill] sm:$0xff] }
 0x100   : > { %933 = vst [vmem:[%s2424_s9 + $0xc0] sm:$0xff] %v869_v44  ;;  %v756_v44 = vmul.f32 %v2311_v5, %v3008_v38  ;;  %v878_v17 = vadd.f32 %v2383_v1, %v813_v59  ;;  %v817_v13 = vadd.f32 %v753_v57, %v688_v54  ;;  %v692_v2 = vadd.f32 %v2308_v39, %v3009_v25  ;;  %v3019_v54 = vld [vmem:[#allocation80_spill] sm:$0xff]  ;;  %v3020_v57 = vld [vmem:[#allocation67_spill] sm:$0xff] }
 0x101   : > { %934 = vst [vmem:[%s2424_s9 + $0xc8] sm:$0xff] %v870_v48  ;;  %v757_v48 = vmul.f32 %v2311_v5, %v3010_v37  ;;  %v879_v42 = vadd.f32 %v2383_v1, %v814_v26  ;;  %v818_v47 = vadd.f32 %v754_v30, %v689_v34  ;;  %v693_v62 = vadd.f32 %v2308_v39, %v3011_v4  ;;  %v3021_v34 = vld [vmem:[#allocation81_spill] sm:$0xff]  ;;  %v3022_v30 = vld [vmem:[#allocation70_spill] sm:$0xff] }
 0x102   : > { %935 = vst [vmem:[%s2424_s9 + $0xd0] sm:$0xff] %v871_v14  ;;  %v758_v14 = vmul.f32 %v2311_v5, %v3012_v46  ;;  %v880_v27 = vadd.f32 %v2383_v1, %v815_v20  ;;  %v819_v3 = vadd.f32 %v755_v32, %v690_v22  ;;  %v694_v52 = vadd.f32 %v2308_v39, %v3013_v61  ;;  %v3023_v22 = vld [vmem:[#allocation83_spill] sm:$0xff]  ;;  %v3024_v32 = vld [vmem:[#allocation73_spill] sm:$0xff] }
 0x103   : > { %936 = vst [vmem:[%s2424_s9 + $0xd8] sm:$0xff] %v872_v50  ;;  %v759_v50 = vmul.f32 %v2311_v5, %v3014_v49  ;;  %v881_v9 = vadd.f32 %v2383_v1, %v816_v33  ;;  %v820_v8 = vadd.f32 %v756_v44, %v691_v55  ;;  %v695_v58 = vadd.f32 %v2308_v39, %v3015_v43  ;;  %v3025_v55 = vld [vmem:[#allocation84_spill] sm:$0xff] }
 0x104   : > { %937 = vst [vmem:[%s2424_s9 + $0xe0] sm:$0xff] %v873_v10  ;;  %v760_v10 = vmul.f32 %v2311_v5, %v3016_v63  ;;  %v882_v12 = vadd.f32 %v2383_v1, %v817_v13  ;;  %v821_v41 = vadd.f32 %v757_v48, %v692_v2  ;;  %v696_v16 = vadd.f32 %v2308_v39, %v3017_v51  ;;  %v3026_v44 = vld [vmem:[#allocation76_spill] sm:$0xff]  ;;  %v3027_v2 = vld [vmem:[#allocation87_spill] sm:$0xff]  ;;  %v3028_v48 = vld [vmem:[#allocation77_spill] sm:$0xff] }
 0x105   : > { %938 = vst [vmem:[%s2424_s9 + $0xe8] sm:$0xff] %v874_v23  ;;  %v761_v23 = vmul.f32 %v2311_v5, %v3018_v18  ;;  %v883_v59 = vadd.f32 %v2383_v1, %v818_v47  ;;  %v822_v21 = vadd.f32 %v758_v14, %v693_v62  ;;  %v697_v19 = vadd.f32 %v2308_v39, %v3019_v54  ;;  %v3029_v62 = vld [vmem:[#allocation89_spill] sm:$0xff]  ;;  %v3030_v14 = vld [vmem:[#allocation79_spill] sm:$0xff] }
 0x106   : > { %939 = vst [vmem:[%s2424_s9 + $0xf0] sm:$0xff] %v875_v7  ;;  %v762_v7 = vmul.f32 %v2311_v5, %v3020_v57  ;;  %v884_v26 = vadd.f32 %v2383_v1, %v819_v3  ;;  %v823_v24 = vadd.f32 %v759_v50, %v694_v52  ;;  %v698_v56 = vadd.f32 %v2308_v39, %v3021_v34  ;;  %v3031_v52 = vld [vmem:[#allocation91_spill] sm:$0xff]  ;;  %v3032_v50 = vld [vmem:[#allocation82_spill] sm:$0xff]  ;;  %v3037_v57 = vld [vmem:[#allocation88_spill] sm:$0xff] }
 0x107   : > { %940 = vst [vmem:[%s2424_s9 + $0xf8] sm:$0xff] %v876_v28  ;;  %v763_v28 = vmul.f32 %v2311_v5, %v3022_v30  ;;  %v885_v20 = vadd.f32 %v2383_v1, %v820_v8  ;;  %v824_v60 = vadd.f32 %v760_v10, %v695_v58  ;;  %v699_v35 = vadd.f32 %v2308_v39, %v3023_v22  ;;  %v3033_v58 = vld [vmem:[#allocation92_spill] sm:$0xff]  ;;  %v3034_v10 = vld [vmem:[#allocation85_spill] sm:$0xff]  ;;  %v3039_v30 = vld [vmem:[#allocation90_spill] sm:$0xff] }
 0x108   : > { %941 = vst [vmem:[%s2424_s9 + $0x100] sm:$0xff] %v877_v40  ;;  %v764_v40 = vmul.f32 %v2311_v5, %v3024_v32  ;;  %v886_v33 = vadd.f32 %v2383_v1, %v821_v41  ;;  %v825_v31 = vadd.f32 %v761_v23, %v696_v16  ;;  %v700_v38 = vadd.f32 %v2308_v39, %v3025_v55  ;;  %v3035_v16 = vld [vmem:[#allocation95_spill] sm:$0xff]  ;;  %v3036_v23 = vld [vmem:[#allocation86_spill] sm:$0xff]  ;;  %v3038_v34 = vld [vmem:[#allocation97_spill] sm:$0xff] }
 0x109   : > { %942 = vst [vmem:[%s2424_s9 + $0x108] sm:$0xff] %v878_v17  ;;  %v765_v17 = vmul.f32 %v2311_v5, %v3026_v44  ;;  %v887_v13 = vadd.f32 %v2383_v1, %v822_v21  ;;  %v826_v25 = vadd.f32 %v762_v7, %v697_v19  ;;  %v701_v37 = vadd.f32 %v2308_v39, %v3027_v2  ;;  %v3040_v22 = vld [vmem:[#allocation93_spill] sm:$0xff]  ;;  %v3042_v55 = vld [vmem:[#allocation94_spill] sm:$0xff] }
 0x10a   : > { %943 = vst [vmem:[%s2424_s9 + $0x110] sm:$0xff] %v879_v42  ;;  %v766_v42 = vmul.f32 %v2311_v5, %v3028_v48  ;;  %v888_v47 = vadd.f32 %v2383_v1, %v823_v24  ;;  %v827_v4 = vadd.f32 %v763_v28, %v698_v56  ;;  %v702_v46 = vadd.f32 %v2308_v39, %v3029_v62 }
 0x10b   : > { %944 = vst [vmem:[%s2424_s9 + $0x118] sm:$0xff] %v880_v27  ;;  %v767_v27 = vmul.f32 %v2311_v5, %v3030_v14  ;;  %v889_v3 = vadd.f32 %v2383_v1, %v824_v60  ;;  %v828_v61 = vadd.f32 %v764_v40, %v699_v35  ;;  %v703_v49 = vadd.f32 %v2308_v39, %v3031_v52 }
 0x10c   : > { %945 = vst [vmem:[%s2424_s9 + $0x120] sm:$0xff] %v881_v9  ;;  %v768_v9 = vmul.f32 %v2311_v5, %v3032_v50  ;;  %v890_v8 = vadd.f32 %v2383_v1, %v825_v31  ;;  %v829_v43 = vadd.f32 %v765_v17, %v700_v38  ;;  %v704_v63 = vadd.f32 %v2308_v39, %v3033_v58 }
 0x10d   : > { %946 = vst [vmem:[%s2424_s9 + $0x128] sm:$0xff] %v882_v12  ;;  %v769_v12 = vmul.f32 %v2311_v5, %v3034_v10  ;;  %v891_v41 = vadd.f32 %v2383_v1, %v826_v25  ;;  %v830_v51 = vadd.f32 %v766_v42, %v701_v37  ;;  %v705_v18 = vadd.f32 %v2308_v39, %v3035_v16  ;;  %v3044_v42 = vld [vmem:[#allocation98_spill] sm:$0xff] }
 0x10e   : > { %947 = vst [vmem:[%s2424_s9 + $0x130] sm:$0xff] %v883_v59  ;;  %v770_v59 = vmul.f32 %v2311_v5, %v3036_v23  ;;  %v892_v21 = vadd.f32 %v2383_v1, %v827_v4  ;;  %v831_v54 = vadd.f32 %v767_v27, %v702_v46  ;;  %v706_v19 = vadd.f32 %v2308_v39, %v2292_v29  ;;  %v3045_v46 = vld [vmem:[#allocation100_spill] sm:$0xff] }
 0x10f   : > { %948 = vst [vmem:[%s2424_s9 + $0x138] sm:$0xff] %v884_v26  ;;  %v771_v7 = vmul.f32 %v2311_v5, %v3037_v57  ;;  %v893_v26 = vadd.f32 %v2383_v1, %v828_v61  ;;  %v832_v24 = vadd.f32 %v768_v9, %v703_v49  ;;  %v707_v56 = vadd.f32 %v2308_v39, %v3038_v34  ;;  %v3046_v61 = vld [vmem:[#allocation101_spill] sm:$0xff] }
 0x110   : > { %949 = vst [vmem:[%s2424_s9 + $0x140] sm:$0xff] %v885_v20  ;;  %v772_v28 = vmul.f32 %v2311_v5, %v3039_v30  ;;  %v894_v20 = vadd.f32 %v2383_v1, %v829_v43  ;;  %v833_v60 = vadd.f32 %v769_v12, %v704_v63  ;;  %v708_v29 = vadd.f32 %v2308_v39, %v2315_v15 }
 0x111   : > { %950 = vst [vmem:[%s2424_s9 + $0x148] sm:$0xff] %v886_v33  ;;  %v773_v35 = vmul.f32 %v2311_v5, %v3040_v22  ;;  %v895_v32 = vadd.f32 %v2383_v1, %v830_v51  ;;  %v834_v40 = vadd.f32 %v770_v59, %v705_v18  ;;  %v3041_v33 = vld [vmem:[#allocation99_spill] sm:$0xff]  ;;  %v774_v38 = vmul.f32 %v2311_v5, %v3042_v55 }
 0x112   : > { %951 = vst [vmem:[%s2424_s9 + $0x150] sm:$0xff] %v887_v13  ;;  %v709_v31 = vadd.f32 %v2308_v39, %v3041_v33  ;;  %v896_v44 = vadd.f32 %v2383_v1, %v831_v54  ;;  %v835_v17 = vadd.f32 %v771_v7, %v706_v19  ;;  %v710_v15 = vadd.f32 %v2308_v39, %v2325_v11  ;;  %v3043_v13 = vld [vmem:[#allocation96_spill] sm:$0xff] }
 0x113   : > { %952 = vst [vmem:[%s2424_s9 + $0x158] sm:$0xff] %v888_v47  ;;  %v775_v25 = vmul.f32 %v2311_v5, %v3043_v13  ;;  %v897_v2 = vadd.f32 %v2383_v1, %v832_v24  ;;  %v836_v37 = vadd.f32 %v772_v28, %v707_v56  ;;  %v711_v48 = vadd.f32 %v2308_v39, %v2328_v45 }
 0x114   : > { %953 = vst [vmem:[%s2424_s9 + $0x160] sm:$0xff] %v889_v3  ;;  %v776_v47 = vmul.f32 %v2311_v5, %v3044_v42  ;;  %v898_v4 = vadd.f32 %v2383_v1, %v833_v60  ;;  %v837_v11 = vadd.f32 %v773_v35, %v708_v29  ;;  %v712_v62 = vadd.f32 %v2308_v39, %v2347_v53 }
 0x115   : > { %954 = vst [vmem:[%s2424_s9 + $0x168] sm:$0xff] %v890_v8  ;;  %v777_v14 = vmul.f32 %v2311_v5, %v3045_v46  ;;  %v899_v27 = vadd.f32 %v2383_v1, %v834_v40  ;;  %v838_v45 = vadd.f32 %v774_v38, %v709_v31  ;;  %v713_v3 = vadd.f32 %v2308_v39, %v2357_v0 }
 0x116   : > { %955 = vst [vmem:[%s2424_s9 + $0x170] sm:$0xff] %v891_v41  ;;  %v778_v52 = vmul.f32 %v2311_v5, %v3046_v61  ;;  %v900_v49 = vadd.f32 %v2383_v1, %v835_v17  ;;  %v839_v53 = vadd.f32 %v775_v25, %v710_v15  ;;  %v714_v50 = vadd.f32 %v2308_v39, %v2370_v6 }
 0x117   : > { %956 = vst [vmem:[%s2424_s9 + $0x178] sm:$0xff] %v892_v21  ;;  %v779_v9 = vmul.f32 %v2311_v5, %v2360_v36  ;;  %v901_v0 = vadd.f32 %v2383_v1, %v836_v37  ;;  %v840_v8 = vadd.f32 %v776_v47, %v711_v48  ;;  %v902_v43 = vadd.f32 %v2383_v1, %v837_v11 }
 0x118   : > { %957 = vst [vmem:[%s2424_s9 + $0x180] sm:$0xff] %v893_v26  ;;  %v841_v58 = vadd.f32 %v777_v14, %v712_v62  ;;  %v903_v63 = vadd.f32 %v2383_v1, %v838_v45  ;;  %v842_v39 = vadd.f32 %v778_v52, %v713_v3  ;;  %v904_v5 = vadd.f32 %v2383_v1, %v839_v53 }
 0x119   : > { %958 = vst [vmem:[%s2424_s9 + $0x188] sm:$0xff] %v894_v20  ;;  %v843_v36 = vadd.f32 %v779_v9, %v714_v50  ;;  %v905_v6 = vadd.f32 %v2383_v1, %v840_v8 }
 0x11a   : > { %959 = vst [vmem:[%s2424_s9 + $0x190] sm:$0xff] %v895_v32  ;;  %v906_v10 = vadd.f32 %v2383_v1, %v841_v58  ;;  %v907_v12 = vadd.f32 %v2383_v1, %v842_v39 }
 0x11b   : > { %960 = vst [vmem:[%s2424_s9 + $0x198] sm:$0xff] %v896_v44  ;;  %v908_v41 = vadd.f32 %v2383_v1, %v843_v36 }
 0x11c   : > { %961 = vst [vmem:[%s2424_s9 + $0x1a0] sm:$0xff] %v897_v2 }
 0x11d   : > { %962 = vst [vmem:[%s2424_s9 + $0x1a8] sm:$0xff] %v898_v4 }
 0x11e   : > { %963 = vst [vmem:[%s2424_s9 + $0x1b0] sm:$0xff] %v899_v27 }
 0x11f   : > { %964 = vst [vmem:[%s2424_s9 + $0x1b8] sm:$0xff] %v900_v49 }
 0x120   : > { %965 = vst [vmem:[%s2424_s9 + $0x1c0] sm:$0xff] %v901_v0 }
 0x121   : > { %966 = vst [vmem:[%s2424_s9 + $0x1c8] sm:$0xff] %v902_v43 }
 0x122   : > { %967 = vst [vmem:[%s2424_s9 + $0x1d0] sm:$0xff] %v903_v63 }
 0x123   : > { %968 = vst [vmem:[%s2424_s9 + $0x1d8] sm:$0xff] %v904_v5 }
 0x124   : > { %969 = vst [vmem:[%s2424_s9 + $0x1e0] sm:$0xff] %v905_v6 }
 0x125   : > { %970 = vst [vmem:[%s2424_s9 + $0x1e8] sm:$0xff] %v906_v10 }
 0x126   : > { %971 = vst [vmem:[%s2424_s9 + $0x1f0] sm:$0xff] %v907_v12 }
 0x127   : > { %972 = vst [vmem:[%s2424_s9 + $0x1f8] sm:$0xff] %v908_v41 }
 0x128   : > { %1340 = shalt.err (!%p1337_p13)
}
 0x129   : > { %s1422_s9 = smov 512   ;;  %s1423_s14 = smov 32  }
 0x12a   : > { %1184 = dma.vmem_to_hbm [thread:$0]  (%p1501_p10), %s2760_s22, 8192, %s995_s1, %s974_s10, %s1422_s9, %s1422_s9, %s1423_s14  }
 0x12b   : > { %s979_s16 = scalar_lea.sflag [#allocation11], %s1573_s6  ;;  %s1355_s17 = sshra.s32 %s2770_s15, 4  ;;  %s1356_s17 = int_to_ptr.hbm [resolvable:$true] %s1355_s17 }
 0x12c   : > { %s1357_s7 = scalar_lea.hbm %s1356_s17, 512  ;;  %s1361_s11 = scalar_lea.hbm %s2820_s4, 2048 }
 0x12d   : > { %p1358_p0 = scmp.ne.s32.totalorder %s1356_s17, %s1357_s7  ;;  %p1362_p7 = scmp.lt.s32.totalorder %s1356_s17, %s2820_s4 }
 0x12e   : > { %p1363_p8 = scmp.lt.s32.totalorder %s1361_s11, %s1357_s7 }
 0x12f   : > { %p1359_p4 = pnand %p1358_p0, %p1501_p10 }
 0x130   : > { %p1364_p6 = por %p1363_p8, %p1362_p7 }
 0x131   : > { %p1360_p5 = pneg %p1359_p4 }
 0x133   : > { %p1365_p12 = pnand %p1364_p6, %p1360_p5 }
 0x135   : > { %1368 = shalt.err (!%p1365_p12)
}
 0x136   : > { %1185 = dma.vmem_to_hbm [thread:$0]  (%p1501_p10), %s2768_s23, 8192, %s2770_s15, %s979_s16, %s1422_s9, %s1422_s9, %s1423_s14  }
 0x137 PF: > { %p1203_p2 = scmp.ge.s32.totalorder %s1417_s0, 2  ;;  %s1027_s6 = sand.u32 1, %s1405_s19  }
 0x138   : > { %s1028_s22 = scalar_lea.sflag [#allocation6], %s1027_s6 }
 0x139   : > { %p1196_p9 = pnand %p1203_p2, %p1505_p11 }
 0x13b   : > { %p1197_p1 = pneg %p1196_p9 }
 0x13d   : > { %1396 = dma.done.wait (%p1197_p1), %s1028_s22, 8192  }
 0x13e   : > { %1398 = vsyncadd (%p1197_p1), %s1028_s22, 4294959104  ;;  %s1038_s1 = scalar_lea.sflag [#allocation11], %s1027_s6 }
 0x13f   : > { %1400 = dma.done.wait (%p1197_p1), %s1038_s1, 8192  }
 0x140   : > { %1402 = vsyncadd (%p1197_p1), %s1038_s1, 4294959104  ;;  %p32_p10 = scmp.ge.s32.totalorder %s1477_s24, 6   ;;  %s3047_s19 = smov %s1409_s20 }
 0x141   : > { %s3048_s20 = smov %s1413_s21  ;;  %s3049_s21 = smov %s1489_s27 }
 0x142   : > { %s3050_s0 = smov %s1477_s24  ;;  %34 = sbr.rel (!%p32_p10) target bundleno = 15 (0xf), region = 103 }
 0x147   :  { %1044 = vsyncpa [#allocation5], 1 }
 0x148   :  { %1046 = vsyncpa [#allocation5 + $0x1], 1 }
 0x149   :  { %1047 = vsyncpa [#allocation8], 1 }
 0x14a   :  { %1049 = vsyncpa [#allocation8 + $0x1], 1 }
 0x14b   :  { %1050 = vsyncpa [#allocation6], 1 }
 0x14c   :  { %1052 = vsyncpa [#allocation6 + $0x1], 1 }
 0x14d   :  { %1053 = vsyncpa [#allocation11], 1 }
 0x14e   :  { %1055 = vsyncpa [#allocation11 + $0x1], 1 }

</bundles_post_ra>
